<compile_context>
chip_gen: v7x
topology: tpu7x:2x2x1
jax: 0.10.0
libtpu: 0.0.40
codegen_flags: <defaults>
</compile_context>

<pallas_src>
import math

import jax
import jax.numpy as jnp
from jax import lax
from jax.experimental import pallas as pl
from jax.experimental.pallas import tpu as pltpu

# Small, TPU-friendly shapes structurally consistent with the module's config
# (n_embd a multiple of 128 and divisible by n_head, seq <= block_size).
N_EMBD = 128
N_HEAD = 4
HEAD_DIM = N_EMBD // N_HEAD
BATCH = 2
SEQ = 8
LN_EPS = 1e-5
# TODO(synk): dropout (attention-weights + MLP, p=0.2) is eval-mode identity; no in-kernel RNG dropout.


def _layer_norm(z, gamma, beta):
    mu = jnp.mean(z, axis=-1, keepdims=True)
    var = jnp.mean((z - mu) ** 2, axis=-1, keepdims=True)
    return (z - mu) * lax.rsqrt(var + LN_EPS) * gamma + beta


def transformer_block_kernel(x_ref, mask_ref, w_qkv_ref, wo_ref, ln_g_ref, ln_b_ref,
                             w_fc_ref, w_proj_ref, o_ref, attn_sc):
    """One grid step processes a (R, C) slab of rows, R = batches_in_block * T."""
    x = x_ref[...].astype(jnp.float32)                      # (R, C)
    R, C = x.shape

    # Fused qkv: Linear(C,3C) followed by MHA in_proj collapsed host-side into a
    # single bf16 (C, 3C) effective weight.
    qkv = jnp.dot(x.astype(jnp.bfloat16), w_qkv_ref[...],
                  preferred_element_type=jnp.float32)       # (R, 3C) f32
    q = qkv[:, 0 * C:1 * C]
    k = qkv[:, 1 * C:2 * C]
    v = qkv[:, 2 * C:3 * C]

    mask = mask_ref[...]                                     # (R, R) additive mask, f32
    scale = jnp.float32(1.0 / math.sqrt(HEAD_DIM))

    # Per-head attention; head outputs go to static lane slices of a VMEM scratch
    # buffer (no concatenate -> no cross-lane relayout).  Softmax kept in f32;
    # the normalization divide is folded into the head output with an EUP
    # approximate reciprocal (R*D elements instead of R*R).
    for h in range(N_HEAD):                                  # static unrolled loop
        sl = slice(h * HEAD_DIM, (h + 1) * HEAD_DIM)
        qh, kh, vh = q[:, sl], k[:, sl], v[:, sl]
        s = jnp.dot(qh, kh.T, preferred_element_type=jnp.float32) * scale + mask
        s = s - jnp.max(s, axis=-1, keepdims=True)           # diag unmasked -> finite max
        p = jnp.exp(s)
        denom = jnp.sum(p, axis=-1, keepdims=True)            # (R, 1)
        pv = jnp.dot(p, vh, preferred_element_type=jnp.float32)
        attn_sc[:, sl] = pv * pl.reciprocal(denom, approx=True)

    attn = jnp.dot(attn_sc[...].astype(jnp.bfloat16), wo_ref[...],
                   preferred_element_type=jnp.float32)       # out_proj, (R, C)

    gamma = ln_g_ref[...]                                    # (1, C) f32
    beta = ln_b_ref[...]

    # residual + LayerNorm (f32 VPU math)
    x1 = _layer_norm(x + attn, gamma, beta)

    # MLP: fc -> exact (erf) GELU -> proj.  bf16 MXU operands, f32 elsewhere.
    h1 = jnp.dot(x1.astype(jnp.bfloat16), w_fc_ref[...],
                 preferred_element_type=jnp.float32)         # (R, 4C)
    h1 = 0.5 * h1 * (1.0 + lax.erf(h1 * jnp.float32(1.0 / math.sqrt(2.0))))
    mlp = jnp.dot(h1.astype(jnp.bfloat16), w_proj_ref[...],
                  preferred_element_type=jnp.float32)        # (R, C)

    # residual + the same LayerNorm again (module applies identical params twice)
    out = _layer_norm(x1 + mlp, gamma, beta)
    o_ref[...] = out.astype(o_ref.dtype)


def _per_batch_grid():
    """True on dual-TensorCore chips (v7x): keep a B-wide parallel grid so both
    cores get work.  On single-TC chips (v5e/v6e) the grid is a serial loop, so
    fold the whole batch into a single program instead."""
    try:
        kind = jax.devices()[0].device_kind.lower()
        return ("v7" in kind) or ("7x" in kind)
    except Exception:
        return False


def _block_causal_mask(nb, t):
    """Additive mask for nb batch elements folded into one (nb*t)-row block:
    causal within a batch element, -inf across batch elements.  Diagonal is
    always unmasked, so softmax rows are never fully masked (no NaN)."""
    r = jnp.arange(nb * t)
    same_batch = (r[:, None] // t) == (r[None, :] // t)
    causal = (r[None, :] % t) <= (r[:, None] % t)
    return jnp.where(same_batch & causal, 0.0, -jnp.inf).astype(jnp.float32)


def transformer_block(x, params):
    B, T, C = x.shape
    H = 4 * C
    hp = lax.Precision.HIGHEST

    # Host-side fusion:  q = (x @ W_lin_q^T) @ Wq^T  ==  x @ (W_lin_q^T @ Wq^T).
    w_lin = params["w_lin"]                                   # (3C, C)
    wq_eff = jnp.dot(w_lin[0 * C:1 * C].T, params["wq"].T, precision=hp)
    wk_eff = jnp.dot(w_lin[1 * C:2 * C].T, params["wk"].T, precision=hp)
    wv_eff = jnp.dot(w_lin[2 * C:3 * C].T, params["wv"].T, precision=hp)
    w_qkv = jnp.concatenate([wq_eff, wk_eff, wv_eff], axis=1).astype(jnp.bfloat16)

    wo_t = params["wo"].T.astype(jnp.bfloat16)
    w_fc_t = params["w_fc"].T.astype(jnp.bfloat16)
    w_proj_t = params["w_proj"].T.astype(jnp.bfloat16)
    ln_g = params["ln_g"][None, :].astype(jnp.float32)
    ln_b = params["ln_b"][None, :].astype(jnp.float32)

    # Grid choice: 1 program with all B*T rows on single-TC chips; B programs
    # (one per TensorCore) on v7x.
    nblocks = B if _per_batch_grid() else 1
    if B % nblocks:
        nblocks = 1
    nb = B // nblocks
    R = nb * T

    x2 = x.reshape(B * T, C)
    mask = _block_causal_mask(nb, T)                          # (R, R)

    # Rough cost hint so XLA can overlap this small custom call with surrounding HLO.
    flops = 2 * B * T * C * C * (3 + 1 + 4 + 4) + 4 * B * N_HEAD * T * T * HEAD_DIM
    transcendentals = B * N_HEAD * T * T + B * T * 4 * C
    bytes_accessed = (2 * B * T * C * 4) + (12 * C * C) * 2 + R * R * 4 + 2 * C * 4

    grid_spec = pltpu.PrefetchScalarGridSpec(
        num_scalar_prefetch=0,
        grid=(nblocks,),
        in_specs=[
            pl.BlockSpec((R, C), lambda i: (i, 0)),           # x rows
            pl.BlockSpec((R, R), lambda i: (0, 0)),           # additive mask (constant)
            pl.BlockSpec((C, 3 * C), lambda i: (0, 0)),       # fused qkv weight (bf16)
            pl.BlockSpec((C, C), lambda i: (0, 0)),           # out_proj^T (bf16)
            pl.BlockSpec((1, C), lambda i: (0, 0)),           # LN gamma
            pl.BlockSpec((1, C), lambda i: (0, 0)),           # LN beta
            pl.BlockSpec((C, H), lambda i: (0, 0)),           # W_fc^T (bf16)
            pl.BlockSpec((H, C), lambda i: (0, 0)),           # W_proj^T (bf16)
        ],
        out_specs=pl.BlockSpec((R, C), lambda i: (i, 0)),
        scratch_shapes=[pltpu.VMEM((R, C), jnp.float32)],     # per-head attention outputs
    )
    # TODO(synk): at this C, weights trivially fit VMEM even double-buffered; when C
    # scales up, single-buffer the constant weight blocks and K-tile the MLP weights.
    out2 = pl.pallas_call(
        transformer_block_kernel,
        out_shape=jax.ShapeDtypeStruct((B * T, C), x.dtype),
        grid_spec=grid_spec,
        compiler_params=pltpu.CompilerParams(dimension_semantics=("parallel",)),
        cost_estimate=pl.CostEstimate(flops=flops,
                                      transcendentals=transcendentals,
                                      bytes_accessed=bytes_accessed),
    )(x2, mask, w_qkv, wo_t, ln_g, ln_b, w_fc_t, w_proj_t)
    return out2.reshape(B, T, C)


def init_params(key):
    C, H = N_EMBD, 4 * N_EMBD
    ks = jax.random.split(key, 5)

    def lin(k, out_dim, in_dim):            # PyTorch Linear default-ish init
        bound = 1.0 / math.sqrt(in_dim)
        return jax.random.uniform(k, (out_dim, in_dim), jnp.float32, -bound, bound)

    in_proj = lin(ks[1], 3 * C, C)          # MHA in_proj_weight (3C, C)
    return dict(
        w_lin=lin(ks[0], 3 * C, C),         # nn.Linear(C, 3C, bias=False)
        wq=in_proj[0 * C:1 * C],
        wk=in_proj[1 * C:2 * C],
        wv=in_proj[2 * C:3 * C],
        wo=lin(ks[2], C, C),                # MHA out_proj (bias=False)
        ln_g=jnp.ones((C,), jnp.float32),
        ln_b=jnp.zeros((C,), jnp.float32),
        w_fc=lin(ks[3], H, C),              # nn.Linear(C, 4C, bias=False)
        w_proj=lin(ks[4], C, H),            # nn.Linear(4C, C, bias=False)
    )


def ref_forward(x, p):
    """Pure-JAX f32 reference mirroring the PyTorch forward (eval mode), unfused."""
    B, T, C = x.shape
    hp = lax.Precision.HIGHEST
    qkv = jnp.einsum("btc,dc->btd", x, p["w_lin"], precision=hp)
    q_in, k_in, v_in = jnp.split(qkv, 3, axis=2)
    q = jnp.einsum("btc,dc->btd", q_in, p["wq"], precision=hp)
    k = jnp.einsum("btc,dc->btd", k_in, p["wk"], precision=hp)
    v = jnp.einsum("btc,dc->btd", v_in, p["wv"], precision=hp)
    q = q.reshape(B, T, N_HEAD, HEAD_DIM).transpose(0, 2, 1, 3)
    k = k.reshape(B, T, N_HEAD, HEAD_DIM).transpose(0, 2, 1, 3)
    v = v.reshape(B, T, N_HEAD, HEAD_DIM).transpose(0, 2, 1, 3)
    s = jnp.einsum("bhtd,bhsd->bhts", q, k, precision=hp) / math.sqrt(HEAD_DIM)
    mask = jnp.where(jnp.triu(jnp.ones((T, T)), 1) == 1, -jnp.inf, 0.0)
    s = s + mask[None, None]
    a = jax.nn.softmax(s, axis=-1)
    o = jnp.einsum("bhts,bhsd->bhtd", a, v, precision=hp)
    o = o.transpose(0, 2, 1, 3).reshape(B, T, C)
    attn = jnp.einsum("btc,dc->btd", o, p["wo"], precision=hp)
    x1 = _layer_norm(x + attn, p["ln_g"], p["ln_b"])
    h1 = jnp.einsum("btc,hc->bth", x1, p["w_fc"], precision=hp)
    h1 = jax.nn.gelu(h1, approximate=False)
    mlp = jnp.einsum("bth,ch->btc", h1, p["w_proj"], precision=hp)
    return _layer_norm(x1 + mlp, p["ln_g"], p["ln_b"])


if __name__ == "__main__":
    key = jax.random.PRNGKey(0)
    k_x, k_p = jax.random.split(key)
    x = jax.random.normal(k_x, (BATCH, SEQ, N_EMBD), jnp.float32)
    params = init_params(k_p)

    out = jax.block_until_ready(transformer_block(x, params))
    ref = jax.block_until_ready(ref_forward(x, params))

    assert out.shape == (BATCH, SEQ, N_EMBD)
    max_diff = float(jnp.max(jnp.abs(out - ref)))
    # tolerance accommodates bf16 MXU operands (LN/softmax/GELU stay in f32)
    assert jnp.allclose(out, ref, rtol=2e-2, atol=2e-2), f"max abs diff {max_diff}"
    print("KERNEL_OK")
</pallas_src>

<mosaic_0001>
module attributes {stable_mosaic.version = 11 : i64} {
  func.func @transformer_block_kernel(%arg0: i32, %arg1: memref<16x128xf32, #tpu.memory_space<vmem>>, %arg2: memref<16x16xf32, #tpu.memory_space<vmem>>, %arg3: memref<128x384xbf16, #tpu.memory_space<vmem>>, %arg4: memref<128x128xbf16, #tpu.memory_space<vmem>>, %arg5: memref<1x128xf32, #tpu.memory_space<vmem>>, %arg6: memref<1x128xf32, #tpu.memory_space<vmem>>, %arg7: memref<128x512xbf16, #tpu.memory_space<vmem>>, %arg8: memref<512x128xbf16, #tpu.memory_space<vmem>>, %arg9: memref<16x128xf32, #tpu.memory_space<vmem>>, %arg10: memref<16x128xf32, #tpu.memory_space<vmem>>) attributes {dimension_semantics = [#tpu.dimension_semantics<parallel>], iteration_bounds = array<i64: 1>, scalar_prefetch = 0 : i64, scratch_operands = 1 : i64, tpu.core_type = #tpu.core_type<tc>, window_params = [{transform_indices = @transform_0, window_bounds = array<i64: 16, 128>}, {pipeline_mode = #tpu.pipeline_mode<synchronous>, transform_indices = @transform_1, window_bounds = array<i64: 16, 16>}, {pipeline_mode = #tpu.pipeline_mode<synchronous>, transform_indices = @transform_2, window_bounds = array<i64: 128, 384>}, {pipeline_mode = #tpu.pipeline_mode<synchronous>, transform_indices = @transform_3, window_bounds = array<i64: 128, 128>}, {pipeline_mode = #tpu.pipeline_mode<synchronous>, transform_indices = @transform_4, window_bounds = array<i64: 1, 128>}, {pipeline_mode = #tpu.pipeline_mode<synchronous>, transform_indices = @transform_5, window_bounds = array<i64: 1, 128>}, {pipeline_mode = #tpu.pipeline_mode<synchronous>, transform_indices = @transform_6, window_bounds = array<i64: 128, 512>}, {pipeline_mode = #tpu.pipeline_mode<synchronous>, transform_indices = @transform_7, window_bounds = array<i64: 512, 128>}, {transform_indices = @transform_8, window_bounds = array<i64: 16, 128>}]} {
    %c0 = arith.constant 0 : index
    %c0_0 = arith.constant 0 : index
    %0 = vector.load %arg1[%c0, %c0_0] : memref<16x128xf32, #tpu.memory_space<vmem>>, vector<16x128xf32>
    %1 = arith.truncf %0 : vector<16x128xf32> to vector<16x128xbf16>
    %c0_1 = arith.constant 0 : index
    %c0_2 = arith.constant 0 : index
    %2 = vector.load %arg3[%c0_1, %c0_2] : memref<128x384xbf16, #tpu.memory_space<vmem>>, vector<128x384xbf16>
    %cst = arith.constant dense<0.000000e+00> : vector<16x384xf32>
    %3 = tpu.matmul %1, %2, %cst {dimension_numbers = #tpu.dot_dimension_numbers<[1], [0], [0], [1], [0, 0, 1, 1], [], []>} : vector<16x128xbf16>, vector<128x384xbf16>, vector<16x384xf32> -> vector<16x384xf32>
    %4 = vector.extract_strided_slice %3 {offsets = [0, 0], sizes = [16, 128], strides = [1, 1]} : vector<16x384xf32> to vector<16x128xf32>
    %5 = vector.extract_strided_slice %3 {offsets = [0, 128], sizes = [16, 128], strides = [1, 1]} : vector<16x384xf32> to vector<16x128xf32>
    %6 = vector.extract_strided_slice %3 {offsets = [0, 256], sizes = [16, 128], strides = [1, 1]} : vector<16x384xf32> to vector<16x128xf32>
    %c0_3 = arith.constant 0 : index
    %c0_4 = arith.constant 0 : index
    %7 = vector.load %arg2[%c0_3, %c0_4] : memref<16x16xf32, #tpu.memory_space<vmem>>, vector<16x16xf32>
    %8 = vector.extract_strided_slice %4 {offsets = [0, 0], sizes = [16, 32], strides = [1, 1]} : vector<16x128xf32> to vector<16x32xf32>
    %9 = vector.extract_strided_slice %5 {offsets = [0, 0], sizes = [16, 32], strides = [1, 1]} : vector<16x128xf32> to vector<16x32xf32>
    %10 = vector.extract_strided_slice %6 {offsets = [0, 0], sizes = [16, 32], strides = [1, 1]} : vector<16x128xf32> to vector<16x32xf32>
    %11 = tpu.transpose %9, [1, 0] : vector<16x32xf32> -> vector<32x16xf32>
    %cst_5 = arith.constant dense<0.000000e+00> : vector<16x16xf32>
    %12 = tpu.matmul %8, %11, %cst_5 {dimension_numbers = #tpu.dot_dimension_numbers<[1], [0], [0], [1], [0, 0, 1, 1], [], []>} : vector<16x32xf32>, vector<32x16xf32>, vector<16x16xf32> -> vector<16x16xf32>
    %cst_6 = arith.constant 0.176776692 : f32
    %13 = vector.broadcast %cst_6 : f32 to vector<16x16xf32>
    %14 = arith.mulf %12, %13 : vector<16x16xf32>
    %15 = arith.addf %14, %7 : vector<16x16xf32>
    %cst_7 = arith.constant dense<0xFF800000> : vector<16xf32>
    %16 = vector.multi_reduction <maximumf>, %15, %cst_7 [1] : vector<16x16xf32> to vector<16xf32>
    %17 = vector.shape_cast %16 : vector<16xf32> to vector<16x1xf32>
    %18 = vector.broadcast %17 : vector<16x1xf32> to vector<16x16xf32>
    %19 = arith.subf %15, %18 : vector<16x16xf32>
    %20 = math.exp %19 : vector<16x16xf32>
    %cst_8 = arith.constant dense<0.000000e+00> : vector<16xf32>
    %21 = vector.multi_reduction <add>, %20, %cst_8 [1] : vector<16x16xf32> to vector<16xf32>
    %22 = vector.shape_cast %21 : vector<16xf32> to vector<16x1xf32>
    %cst_9 = arith.constant dense<0.000000e+00> : vector<16x32xf32>
    %23 = tpu.matmul %20, %10, %cst_9 {dimension_numbers = #tpu.dot_dimension_numbers<[1], [0], [0], [1], [0, 0, 1, 1], [], []>} : vector<16x16xf32>, vector<16x32xf32>, vector<16x32xf32> -> vector<16x32xf32>
    %24 = tpu.reciprocal %22 {approx = true} : vector<16x1xf32> -> vector<16x1xf32>
    %25 = vector.broadcast %24 : vector<16x1xf32> to vector<16x32xf32>
    %26 = arith.mulf %23, %25 : vector<16x32xf32>
    %c0_10 = arith.constant 0 : index
    %c0_11 = arith.constant 0 : index
    %27 = vector.load %arg10[%c0_10, %c0_11] : memref<16x128xf32, #tpu.memory_space<vmem>>, vector<16x32xf32>
    tpu.vector_store %arg10[%c0_10, %c0_11], %26 {strides = array<i32>} : memref<16x128xf32, #tpu.memory_space<vmem>>, vector<16x32xf32>,
    %28 = vector.extract_strided_slice %4 {offsets = [0, 32], sizes = [16, 32], strides = [1, 1]} : vector<16x128xf32> to vector<16x32xf32>
    %29 = vector.extract_strided_slice %5 {offsets = [0, 32], sizes = [16, 32], strides = [1, 1]} : vector<16x128xf32> to vector<16x32xf32>
    %30 = vector.extract_strided_slice %6 {offsets = [0, 32], sizes = [16, 32], strides = [1, 1]} : vector<16x128xf32> to vector<16x32xf32>
    %31 = tpu.transpose %29, [1, 0] : vector<16x32xf32> -> vector<32x16xf32>
    %cst_12 = arith.constant dense<0.000000e+00> : vector<16x16xf32>
    %32 = tpu.matmul %28, %31, %cst_12 {dimension_numbers = #tpu.dot_dimension_numbers<[1], [0], [0], [1], [0, 0, 1, 1], [], []>} : vector<16x32xf32>, vector<32x16xf32>, vector<16x16xf32> -> vector<16x16xf32>
    %cst_13 = arith.constant 0.176776692 : f32
    %33 = vector.broadcast %cst_13 : f32 to vector<16x16xf32>
    %34 = arith.mulf %32, %33 : vector<16x16xf32>
    %35 = arith.addf %34, %7 : vector<16x16xf32>
    %cst_14 = arith.constant dense<0xFF800000> : vector<16xf32>
    %36 = vector.multi_reduction <maximumf>, %35, %cst_14 [1] : vector<16x16xf32> to vector<16xf32>
    %37 = vector.shape_cast %36 : vector<16xf32> to vector<16x1xf32>
    %38 = vector.broadcast %37 : vector<16x1xf32> to vector<16x16xf32>
    %39 = arith.subf %35, %38 : vector<16x16xf32>
    %40 = math.exp %39 : vector<16x16xf32>
    %cst_15 = arith.constant dense<0.000000e+00> : vector<16xf32>
    %41 = vector.multi_reduction <add>, %40, %cst_15 [1] : vector<16x16xf32> to vector<16xf32>
    %42 = vector.shape_cast %41 : vector<16xf32> to vector<16x1xf32>
    %cst_16 = arith.constant dense<0.000000e+00> : vector<16x32xf32>
    %43 = tpu.matmul %40, %30, %cst_16 {dimension_numbers = #tpu.dot_dimension_numbers<[1], [0], [0], [1], [0, 0, 1, 1], [], []>} : vector<16x16xf32>, vector<16x32xf32>, vector<16x32xf32> -> vector<16x32xf32>
    %44 = tpu.reciprocal %42 {approx = true} : vector<16x1xf32> -> vector<16x1xf32>
    %45 = vector.broadcast %44 : vector<16x1xf32> to vector<16x32xf32>
    %46 = arith.mulf %43, %45 : vector<16x32xf32>
    %c0_17 = arith.constant 0 : index
    %c32 = arith.constant 32 : index
    %47 = vector.load %arg10[%c0_17, %c32] : memref<16x128xf32, #tpu.memory_space<vmem>>, vector<16x32xf32>
    tpu.vector_store %arg10[%c0_17, %c32], %46 {strides = array<i32>} : memref<16x128xf32, #tpu.memory_space<vmem>>, vector<16x32xf32>,
    %48 = vector.extract_strided_slice %4 {offsets = [0, 64], sizes = [16, 32], strides = [1, 1]} : vector<16x128xf32> to vector<16x32xf32>
    %49 = vector.extract_strided_slice %5 {offsets = [0, 64], sizes = [16, 32], strides = [1, 1]} : vector<16x128xf32> to vector<16x32xf32>
    %50 = vector.extract_strided_slice %6 {offsets = [0, 64], sizes = [16, 32], strides = [1, 1]} : vector<16x128xf32> to vector<16x32xf32>
    %51 = tpu.transpose %49, [1, 0] : vector<16x32xf32> -> vector<32x16xf32>
    %cst_18 = arith.constant dense<0.000000e+00> : vector<16x16xf32>
    %52 = tpu.matmul %48, %51, %cst_18 {dimension_numbers = #tpu.dot_dimension_numbers<[1], [0], [0], [1], [0, 0, 1, 1], [], []>} : vector<16x32xf32>, vector<32x16xf32>, vector<16x16xf32> -> vector<16x16xf32>
    %cst_19 = arith.constant 0.176776692 : f32
    %53 = vector.broadcast %cst_19 : f32 to vector<16x16xf32>
    %54 = arith.mulf %52, %53 : vector<16x16xf32>
    %55 = arith.addf %54, %7 : vector<16x16xf32>
    %cst_20 = arith.constant dense<0xFF800000> : vector<16xf32>
    %56 = vector.multi_reduction <maximumf>, %55, %cst_20 [1] : vector<16x16xf32> to vector<16xf32>
    %57 = vector.shape_cast %56 : vector<16xf32> to vector<16x1xf32>
    %58 = vector.broadcast %57 : vector<16x1xf32> to vector<16x16xf32>
    %59 = arith.subf %55, %58 : vector<16x16xf32>
    %60 = math.exp %59 : vector<16x16xf32>
    %cst_21 = arith.constant dense<0.000000e+00> : vector<16xf32>
    %61 = vector.multi_reduction <add>, %60, %cst_21 [1] : vector<16x16xf32> to vector<16xf32>
    %62 = vector.shape_cast %61 : vector<16xf32> to vector<16x1xf32>
    %cst_22 = arith.constant dense<0.000000e+00> : vector<16x32xf32>
    %63 = tpu.matmul %60, %50, %cst_22 {dimension_numbers = #tpu.dot_dimension_numbers<[1], [0], [0], [1], [0, 0, 1, 1], [], []>} : vector<16x16xf32>, vector<16x32xf32>, vector<16x32xf32> -> vector<16x32xf32>
    %64 = tpu.reciprocal %62 {approx = true} : vector<16x1xf32> -> vector<16x1xf32>
    %65 = vector.broadcast %64 : vector<16x1xf32> to vector<16x32xf32>
    %66 = arith.mulf %63, %65 : vector<16x32xf32>
    %c0_23 = arith.constant 0 : index
    %c64 = arith.constant 64 : index
    %67 = vector.load %arg10[%c0_23, %c64] : memref<16x128xf32, #tpu.memory_space<vmem>>, vector<16x32xf32>
    tpu.vector_store %arg10[%c0_23, %c64], %66 {strides = array<i32>} : memref<16x128xf32, #tpu.memory_space<vmem>>, vector<16x32xf32>,
    %68 = vector.extract_strided_slice %4 {offsets = [0, 96], sizes = [16, 32], strides = [1, 1]} : vector<16x128xf32> to vector<16x32xf32>
    %69 = vector.extract_strided_slice %5 {offsets = [0, 96], sizes = [16, 32], strides = [1, 1]} : vector<16x128xf32> to vector<16x32xf32>
    %70 = vector.extract_strided_slice %6 {offsets = [0, 96], sizes = [16, 32], strides = [1, 1]} : vector<16x128xf32> to vector<16x32xf32>
    %71 = tpu.transpose %69, [1, 0] : vector<16x32xf32> -> vector<32x16xf32>
    %cst_24 = arith.constant dense<0.000000e+00> : vector<16x16xf32>
    %72 = tpu.matmul %68, %71, %cst_24 {dimension_numbers = #tpu.dot_dimension_numbers<[1], [0], [0], [1], [0, 0, 1, 1], [], []>} : vector<16x32xf32>, vector<32x16xf32>, vector<16x16xf32> -> vector<16x16xf32>
    %cst_25 = arith.constant 0.176776692 : f32
    %73 = vector.broadcast %cst_25 : f32 to vector<16x16xf32>
    %74 = arith.mulf %72, %73 : vector<16x16xf32>
    %75 = arith.addf %74, %7 : vector<16x16xf32>
    %cst_26 = arith.constant dense<0xFF800000> : vector<16xf32>
    %76 = vector.multi_reduction <maximumf>, %75, %cst_26 [1] : vector<16x16xf32> to vector<16xf32>
    %77 = vector.shape_cast %76 : vector<16xf32> to vector<16x1xf32>
    %78 = vector.broadcast %77 : vector<16x1xf32> to vector<16x16xf32>
    %79 = arith.subf %75, %78 : vector<16x16xf32>
    %80 = math.exp %79 : vector<16x16xf32>
    %cst_27 = arith.constant dense<0.000000e+00> : vector<16xf32>
    %81 = vector.multi_reduction <add>, %80, %cst_27 [1] : vector<16x16xf32> to vector<16xf32>
    %82 = vector.shape_cast %81 : vector<16xf32> to vector<16x1xf32>
    %cst_28 = arith.constant dense<0.000000e+00> : vector<16x32xf32>
    %83 = tpu.matmul %80, %70, %cst_28 {dimension_numbers = #tpu.dot_dimension_numbers<[1], [0], [0], [1], [0, 0, 1, 1], [], []>} : vector<16x16xf32>, vector<16x32xf32>, vector<16x32xf32> -> vector<16x32xf32>
    %84 = tpu.reciprocal %82 {approx = true} : vector<16x1xf32> -> vector<16x1xf32>
    %85 = vector.broadcast %84 : vector<16x1xf32> to vector<16x32xf32>
    %86 = arith.mulf %83, %85 : vector<16x32xf32>
    %c0_29 = arith.constant 0 : index
    %c96 = arith.constant 96 : index
    %87 = vector.load %arg10[%c0_29, %c96] : memref<16x128xf32, #tpu.memory_space<vmem>>, vector<16x32xf32>
    tpu.vector_store %arg10[%c0_29, %c96], %86 {strides = array<i32>} : memref<16x128xf32, #tpu.memory_space<vmem>>, vector<16x32xf32>,
    %c0_30 = arith.constant 0 : index
    %c0_31 = arith.constant 0 : index
    %88 = vector.load %arg10[%c0_30, %c0_31] : memref<16x128xf32, #tpu.memory_space<vmem>>, vector<16x128xf32>
    %89 = arith.truncf %88 : vector<16x128xf32> to vector<16x128xbf16>
    %c0_32 = arith.constant 0 : index
    %c0_33 = arith.constant 0 : index
    %90 = vector.load %arg4[%c0_32, %c0_33] : memref<128x128xbf16, #tpu.memory_space<vmem>>, vector<128x128xbf16>
    %cst_34 = arith.constant dense<0.000000e+00> : vector<16x128xf32>
    %91 = tpu.matmul %89, %90, %cst_34 {dimension_numbers = #tpu.dot_dimension_numbers<[1], [0], [0], [1], [0, 0, 1, 1], [], []>} : vector<16x128xbf16>, vector<128x128xbf16>, vector<16x128xf32> -> vector<16x128xf32>
    %c0_35 = arith.constant 0 : index
    %c0_36 = arith.constant 0 : index
    %92 = vector.load %arg5[%c0_35, %c0_36] : memref<1x128xf32, #tpu.memory_space<vmem>>, vector<1x128xf32>
    %c0_37 = arith.constant 0 : index
    %c0_38 = arith.constant 0 : index
    %93 = vector.load %arg6[%c0_37, %c0_38] : memref<1x128xf32, #tpu.memory_space<vmem>>, vector<1x128xf32>
    %94 = arith.addf %0, %91 : vector<16x128xf32>
    %cst_39 = arith.constant dense<0.000000e+00> : vector<16xf32>
    %95 = vector.multi_reduction <add>, %94, %cst_39 [1] : vector<16x128xf32> to vector<16xf32>
    %96 = vector.shape_cast %95 : vector<16xf32> to vector<16x1xf32>
    %cst_40 = arith.constant 1.280000e+02 : f32
    %97 = vector.broadcast %cst_40 : f32 to vector<16x1xf32>
    %98 = arith.divf %96, %97 : vector<16x1xf32>
    %99 = vector.broadcast %98 : vector<16x1xf32> to vector<16x128xf32>
    %100 = arith.subf %94, %99 : vector<16x128xf32>
    %101 = arith.mulf %100, %100 : vector<16x128xf32>
    %cst_41 = arith.constant dense<0.000000e+00> : vector<16xf32>
    %102 = vector.multi_reduction <add>, %101, %cst_41 [1] : vector<16x128xf32> to vector<16xf32>
    %103 = vector.shape_cast %102 : vector<16xf32> to vector<16x1xf32>
    %cst_42 = arith.constant 1.280000e+02 : f32
    %104 = vector.broadcast %cst_42 : f32 to vector<16x1xf32>
    %105 = arith.divf %103, %104 : vector<16x1xf32>
    %106 = vector.broadcast %98 : vector<16x1xf32> to vector<16x128xf32>
    %107 = arith.subf %94, %106 : vector<16x128xf32>
    %cst_43 = arith.constant 9.99999974E-6 : f32
    %108 = vector.broadcast %cst_43 : f32 to vector<16x1xf32>
    %109 = arith.addf %105, %108 : vector<16x1xf32>
    %110 = math.rsqrt %109 : vector<16x1xf32>
    %111 = vector.broadcast %110 : vector<16x1xf32> to vector<16x128xf32>
    %112 = arith.mulf %107, %111 : vector<16x128xf32>
    %113 = vector.broadcast %92 : vector<1x128xf32> to vector<16x128xf32>
    %114 = arith.mulf %112, %113 : vector<16x128xf32>
    %115 = vector.broadcast %93 : vector<1x128xf32> to vector<16x128xf32>
    %116 = arith.addf %114, %115 : vector<16x128xf32>
    %117 = arith.truncf %116 : vector<16x128xf32> to vector<16x128xbf16>
    %c0_44 = arith.constant 0 : index
    %c0_45 = arith.constant 0 : index
    %118 = vector.load %arg7[%c0_44, %c0_45] : memref<128x512xbf16, #tpu.memory_space<vmem>>, vector<128x512xbf16>
    %cst_46 = arith.constant dense<0.000000e+00> : vector<16x512xf32>
    %119 = tpu.matmul %117, %118, %cst_46 {dimension_numbers = #tpu.dot_dimension_numbers<[1], [0], [0], [1], [0, 0, 1, 1], [], []>} : vector<16x128xbf16>, vector<128x512xbf16>, vector<16x512xf32> -> vector<16x512xf32>
    %cst_47 = arith.constant 5.000000e-01 : f32
    %120 = vector.broadcast %cst_47 : f32 to vector<16x512xf32>
    %121 = arith.mulf %120, %119 : vector<16x512xf32>
    %cst_48 = arith.constant 0.707106769 : f32
    %122 = vector.broadcast %cst_48 : f32 to vector<16x512xf32>
    %123 = arith.mulf %119, %122 : vector<16x512xf32>
    %124 = math.erf %123 : vector<16x512xf32>
    %cst_49 = arith.constant 1.000000e+00 : f32
    %125 = vector.broadcast %cst_49 : f32 to vector<16x512xf32>
    %126 = arith.addf %125, %124 : vector<16x512xf32>
    %127 = arith.mulf %121, %126 : vector<16x512xf32>
    %128 = arith.truncf %127 : vector<16x512xf32> to vector<16x512xbf16>
    %c0_50 = arith.constant 0 : index
    %c0_51 = arith.constant 0 : index
    %129 = vector.load %arg8[%c0_50, %c0_51] : memref<512x128xbf16, #tpu.memory_space<vmem>>, vector<512x128xbf16>
    %cst_52 = arith.constant dense<0.000000e+00> : vector<16x128xf32>
    %130 = tpu.matmul %128, %129, %cst_52 {dimension_numbers = #tpu.dot_dimension_numbers<[1], [0], [0], [1], [0, 0, 1, 1], [], []>} : vector<16x512xbf16>, vector<512x128xbf16>, vector<16x128xf32> -> vector<16x128xf32>
    %131 = arith.addf %116, %130 : vector<16x128xf32>
    %cst_53 = arith.constant dense<0.000000e+00> : vector<16xf32>
    %132 = vector.multi_reduction <add>, %131, %cst_53 [1] : vector<16x128xf32> to vector<16xf32>
    %133 = vector.shape_cast %132 : vector<16xf32> to vector<16x1xf32>
    %cst_54 = arith.constant 1.280000e+02 : f32
    %134 = vector.broadcast %cst_54 : f32 to vector<16x1xf32>
    %135 = arith.divf %133, %134 : vector<16x1xf32>
    %136 = vector.broadcast %135 : vector<16x1xf32> to vector<16x128xf32>
    %137 = arith.subf %131, %136 : vector<16x128xf32>
    %138 = arith.mulf %137, %137 : vector<16x128xf32>
    %cst_55 = arith.constant dense<0.000000e+00> : vector<16xf32>
    %139 = vector.multi_reduction <add>, %138, %cst_55 [1] : vector<16x128xf32> to vector<16xf32>
    %140 = vector.shape_cast %139 : vector<16xf32> to vector<16x1xf32>
    %cst_56 = arith.constant 1.280000e+02 : f32
    %141 = vector.broadcast %cst_56 : f32 to vector<16x1xf32>
    %142 = arith.divf %140, %141 : vector<16x1xf32>
    %143 = vector.broadcast %135 : vector<16x1xf32> to vector<16x128xf32>
    %144 = arith.subf %131, %143 : vector<16x128xf32>
    %cst_57 = arith.constant 9.99999974E-6 : f32
    %145 = vector.broadcast %cst_57 : f32 to vector<16x1xf32>
    %146 = arith.addf %142, %145 : vector<16x1xf32>
    %147 = math.rsqrt %146 : vector<16x1xf32>
    %148 = vector.broadcast %147 : vector<16x1xf32> to vector<16x128xf32>
    %149 = arith.mulf %144, %148 : vector<16x128xf32>
    %150 = vector.broadcast %92 : vector<1x128xf32> to vector<16x128xf32>
    %151 = arith.mulf %149, %150 : vector<16x128xf32>
    %152 = vector.broadcast %93 : vector<1x128xf32> to vector<16x128xf32>
    %153 = arith.addf %151, %152 : vector<16x128xf32>
    %c0_58 = arith.constant 0 : index
    %c0_59 = arith.constant 0 : index
    %154 = vector.load %arg9[%c0_58, %c0_59] : memref<16x128xf32, #tpu.memory_space<vmem>>, vector<16x128xf32>
    tpu.vector_store %arg9[%c0_58, %c0_59], %153 {strides = array<i32>} : memref<16x128xf32, #tpu.memory_space<vmem>>, vector<16x128xf32>,
    return
  }
  func.func @transform_0(%arg0: i32) -> (i32, i32) {
    %c0_i32 = arith.constant 0 : i32
    %c0_i32_0 = arith.constant 0 : i32
    return %arg0, %c0_i32 : i32, i32
  }
  func.func @transform_1(%arg0: i32) -> (i32, i32) {
    %c0_i32 = arith.constant 0 : i32
    %c0_i32_0 = arith.constant 0 : i32
    %c0_i32_1 = arith.constant 0 : i32
    return %c0_i32, %c0_i32_0 : i32, i32
  }
  func.func @transform_2(%arg0: i32) -> (i32, i32) {
    %c0_i32 = arith.constant 0 : i32
    %c0_i32_0 = arith.constant 0 : i32
    %c0_i32_1 = arith.constant 0 : i32
    return %c0_i32, %c0_i32_0 : i32, i32
  }
  func.func @transform_3(%arg0: i32) -> (i32, i32) {
    %c0_i32 = arith.constant 0 : i32
    %c0_i32_0 = arith.constant 0 : i32
    %c0_i32_1 = arith.constant 0 : i32
    return %c0_i32, %c0_i32_0 : i32, i32
  }
  func.func @transform_4(%arg0: i32) -> (i32, i32) {
    %c0_i32 = arith.constant 0 : i32
    %c0_i32_0 = arith.constant 0 : i32
    %c0_i32_1 = arith.constant 0 : i32
    return %c0_i32, %c0_i32_0 : i32, i32
  }
  func.func @transform_5(%arg0: i32) -> (i32, i32) {
    %c0_i32 = arith.constant 0 : i32
    %c0_i32_0 = arith.constant 0 : i32
    %c0_i32_1 = arith.constant 0 : i32
    return %c0_i32, %c0_i32_0 : i32, i32
  }
  func.func @transform_6(%arg0: i32) -> (i32, i32) {
    %c0_i32 = arith.constant 0 : i32
    %c0_i32_0 = arith.constant 0 : i32
    %c0_i32_1 = arith.constant 0 : i32
    return %c0_i32, %c0_i32_0 : i32, i32
  }
  func.func @transform_7(%arg0: i32) -> (i32, i32) {
    %c0_i32 = arith.constant 0 : i32
    %c0_i32_0 = arith.constant 0 : i32
    %c0_i32_1 = arith.constant 0 : i32
    return %c0_i32, %c0_i32_0 : i32, i32
  }
  func.func @transform_8(%arg0: i32) -> (i32, i32) {
    %c0_i32 = arith.constant 0 : i32
    %c0_i32_0 = arith.constant 0 : i32
    return %arg0, %c0_i32 : i32, i32
  }
}

</mosaic_0001>

<bundles_post_ra>
// kernel: tpu_custom_call.1
= control target key start
LH: loop header
LB: loop body
LE: loop exit
PB: predicated region body
PF: predicated region fallthrough
CT: control target
= control target key end

     0   :  { %13 = vsyncpa [#allocation4], 0  ;;  %s3184_s0 = inlined_call_operand.hbm [shape: f32[16,128], index: 0, kind: input, shape index: {}]   ;;  %s3185_s1 = inlined_call_operand.hbm [shape: f32[16,16], index: 1, kind: input, shape index: {}]   ;;  %s3186_s2 = inlined_call_operand.hbm [shape: bf16[128,384], index: 2, kind: input, shape index: {}]   ;;  %s3187_s3 = inlined_call_operand.hbm [shape: bf16[128,128], index: 3, kind: input, shape index: {}]   ;;  %s3188_s4 = inlined_call_operand.vmem [shape: f32[1,128], index: 4, kind: input, shape index: {}]   ;;  %s3189_s5 = inlined_call_operand.vmem [shape: f32[1,128], index: 5, kind: input, shape index: {}]   ;;  %s3190_s6 = inlined_call_operand.hbm [shape: bf16[128,512], index: 6, kind: input, shape index: {}]   ;;  %s3191_s7 = inlined_call_operand.hbm [shape: bf16[512,128], index: 7, kind: input, shape index: {}]   ;;  %s3192_s8 = inlined_call_operand.hbm [shape: f32[16,128], index: 8, kind: output, shape index: {}]  }
   0x1   :  { %14 = vsyncpa [#allocation7], 0 }
   0x2   :  { %15 = vsyncpa [#allocation10], 0 }
   0x3   :  { %16 = vsyncpa [#allocation13], 0 }
   0x4   :  { %17 = vsyncpa [#allocation5], 0  ;;  %s2811_s27 = smov [#allocation6]   ;;  %s2812_s29 = smov [#allocation9]  }
   0x5   :  { %s35_s28 = sshll.u32 %s2811_s27, 4  ;;  %s59_s30 = sshll.u32 %s2812_s29, 4  ;;  %s36_s28 = int_to_ptr.vmem [resolvable:$true] %s35_s28  ;;  %s2876_s30 = int_to_ptr.vmem [resolvable:$true] %s59_s30 }
   0x6   :  { %s2647_s11 = scalar_lea.hbm %s3185_s1, 256 }
   0x7   :  { %p2648_p0 = scmp.ne.s32.totalorder %s3185_s1, %s2647_s11  ;;  %p2651_p1 = scmp.lt.u32.totalorder %s2647_s11, %s3185_s1 }
   0x9   :  { %p2653_p2 = pnand %p2651_p1, %p2648_p0 }
   0xb   :  { %2656 = shalt.err (!%p2653_p2)
}
   0xc   :  { %s2657_s16 = scalar_lea.vmem %s36_s28, 256  ;;  %p2662_p4 = scmp.lt.s32.totalorder %s36_s28, %s36_s28 }
   0xd   :  { %p2658_p3 = scmp.ne.s32.totalorder %s36_s28, %s2657_s16  ;;  %p2663_p5 = scmp.lt.s32.totalorder %s2657_s16, %s2657_s16 }
   0xf   :  { %p2664_p6 = por %p2663_p5, %p2662_p4 }
  0x11   :  { %p2665_p7 = pnand %p2664_p6, %p2658_p3 }
  0x13   :  { %2668 = shalt.err (!%p2665_p7)
}
  0x14   :  { %s2813_s17 = smov 128   ;;  %s2814_s18 = smov 8  }
  0x15   :  { %41 = dma.hbm_to_vmem [thread:$0]  %s3185_s1, 256, %s36_s28, [#allocation7], %s2813_s17, %s2813_s17, %s2814_s18  }
  0x16   :  { %s2669_s23 = scalar_lea.hbm %s3187_s3, 1024 }
  0x17   :  { %p2670_p8 = scmp.ne.s32.totalorder %s3187_s3, %s2669_s23  ;;  %p2673_p9 = scmp.lt.u32.totalorder %s2669_s23, %s3187_s3 }
  0x19   :  { %p2675_p10 = pnand %p2673_p9, %p2670_p8 }
  0x1b   :  { %2678 = shalt.err (!%p2675_p10)
}
  0x1c   :  { %s2679_s29 = scalar_lea.vmem %s2876_s30, 1024  ;;  %p2684_p12 = scmp.lt.s32.totalorder %s2876_s30, %s2876_s30 }
  0x1d   :  { %p2680_p11 = scmp.ne.s32.totalorder %s2876_s30, %s2679_s29  ;;  %p2685_p13 = scmp.lt.s32.totalorder %s2679_s29, %s2679_s29 }
  0x1f   :  { %p2686_p0 = por %p2685_p13, %p2684_p12 }
  0x21   :  { %p2687_p1 = pnand %p2686_p0, %p2680_p11 }
  0x23   :  { %2690 = shalt.err (!%p2687_p1)
}
  0x24   :  { %s2815_s1 = smov 64   ;;  %s2816_s28 = smov 4  }
  0x25   :  { %65 = dma.hbm_to_vmem [thread:$0]  %s3187_s3, 1024, %s2876_s30, [#allocation10], %s2815_s1, %s2815_s1, %s2816_s28  }
  0x26   :  { %s2817_s11 = smov [#allocation3]   ;;  %s2818_s13 = smov [#allocation8]  }
  0x27   :  { %s23_s12 = sshll.u32 %s2817_s11, 4  ;;  %s47_s14 = sshll.u32 %s2818_s13, 4  ;;  %s24_s12 = int_to_ptr.vmem [resolvable:$true] %s23_s12  ;;  %s2913_s14 = int_to_ptr.vmem [resolvable:$true] %s47_s14 }
  0x28   :  { %s2691_s19 = scalar_lea.hbm %s3184_s0, 256 }
  0x29   :  { %p2692_p2 = scmp.ne.s32.totalorder %s3184_s0, %s2691_s19  ;;  %p2695_p3 = scmp.lt.u32.totalorder %s2691_s19, %s3184_s0 }
  0x2b   :  { %p2697_p4 = pnand %p2695_p3, %p2692_p2 }
  0x2d   :  { %2700 = shalt.err (!%p2697_p4)
}
  0x2e   :  { %s2701_s3 = scalar_lea.vmem %s24_s12, 256  ;;  %p2706_p6 = scmp.lt.s32.totalorder %s24_s12, %s24_s12 }
  0x2f   :  { %p2702_p5 = scmp.ne.s32.totalorder %s24_s12, %s2701_s3  ;;  %p2707_p7 = scmp.lt.s32.totalorder %s2701_s3, %s2701_s3 }
  0x31   :  { %p2708_p8 = por %p2707_p7, %p2706_p6 }
  0x33   :  { %p2709_p9 = pnand %p2708_p8, %p2702_p5 }
  0x35   :  { %2712 = shalt.err (!%p2709_p9)
}
  0x36   :  { %29 = dma.hbm_to_vmem [thread:$0]  %s3184_s0, 256, %s24_s12, [#allocation4], %s2813_s17, %s2813_s17, %s2814_s18  }
  0x37   :  { %s2713_s27 = scalar_lea.hbm %s3186_s2, 3072 }
  0x38   :  { %p2714_p10 = scmp.ne.s32.totalorder %s3186_s2, %s2713_s27  ;;  %p2717_p11 = scmp.lt.u32.totalorder %s2713_s27, %s3186_s2 }
  0x3a   :  { %p2719_p12 = pnand %p2717_p11, %p2714_p10 }
  0x3c   :  { %2722 = shalt.err (!%p2719_p12)
}
  0x3d   :  { %s2723_s13 = scalar_lea.vmem %s2913_s14, 3072  ;;  %p2728_p0 = scmp.lt.s32.totalorder %s2913_s14, %s2913_s14 }
  0x3e   :  { %p2724_p13 = scmp.ne.s32.totalorder %s2913_s14, %s2723_s13  ;;  %p2729_p1 = scmp.lt.s32.totalorder %s2723_s13, %s2723_s13 }
  0x40   :  { %p2730_p2 = por %p2729_p1, %p2728_p0 }
  0x42   :  { %p2731_p3 = pnand %p2730_p2, %p2724_p13 }
  0x44   :  { %2734 = shalt.err (!%p2731_p3)
}
  0x45   :  { %s2819_s0 = smov 192   ;;  %s2820_s12 = smov 12  }
  0x46   :  { %53 = dma.hbm_to_vmem [thread:$0]  %s3186_s2, 3072, %s2913_s14, [#allocation7], %s2819_s0, %s2819_s0, %s2820_s12  }
  0x47   :  { %s2821_s19 = smov [#allocation11]   ;;  %s2735_s23 = scalar_lea.hbm %s3190_s6, 4096 }
  0x48   :  { %s75_s20 = sshll.u32 %s2821_s19, 4  ;;  %p2736_p4 = scmp.ne.s32.totalorder %s3190_s6, %s2735_s23  ;;  %s76_s20 = int_to_ptr.vmem [resolvable:$true] %s75_s20 }
  0x49   :  { %p2739_p5 = scmp.lt.u32.totalorder %s2735_s23, %s3190_s6 }
  0x4b   :  { %p2741_p6 = pnand %p2739_p5, %p2736_p4 }
  0x4d   :  { %2744 = shalt.err (!%p2741_p6)
}
  0x4e   :  { %s2745_s26 = scalar_lea.vmem %s76_s20, 4096  ;;  %p2750_p8 = scmp.lt.s32.totalorder %s76_s20, %s76_s20 }
  0x4f   :  { %p2746_p7 = scmp.ne.s32.totalorder %s76_s20, %s2745_s26  ;;  %p2751_p9 = scmp.lt.s32.totalorder %s2745_s26, %s2745_s26 }
  0x51   :  { %p2752_p10 = por %p2751_p9, %p2750_p8 }
  0x53   :  { %p2753_p11 = pnand %p2752_p10, %p2746_p7 }
  0x55   :  { %2756 = shalt.err (!%p2753_p11)
}
  0x56   :  { %s2822_s2 = smov 256   ;;  %s2823_s14 = smov 16  }
  0x57   :  { %81 = dma.hbm_to_vmem [thread:$0]  %s3190_s6, 4096, %s76_s20, [#allocation10], %s2822_s2, %s2822_s2, %s2823_s14  }
  0x58   :  { %s2824_s9 = smov [#allocation12]   ;;  %s2757_s0 = scalar_lea.hbm %s3191_s7, 4096 }
  0x59   :  { %s87_s10 = sshll.u32 %s2824_s9, 4  ;;  %p2758_p12 = scmp.ne.s32.totalorder %s3191_s7, %s2757_s0  ;;  %s88_s10 = int_to_ptr.vmem [resolvable:$true] %s87_s10 }
  0x5a   :  { %p2761_p13 = scmp.lt.u32.totalorder %s2757_s0, %s3191_s7 }
  0x5c   :  { %p2763_p0 = pnand %p2761_p13, %p2758_p12 }
  0x5e   :  { %2766 = shalt.err (!%p2763_p0)
}
  0x5f   :  { %s2767_s21 = scalar_lea.vmem %s88_s10, 4096  ;;  %p2772_p2 = scmp.lt.s32.totalorder %s88_s10, %s88_s10 }
  0x60   :  { %p2768_p1 = scmp.ne.s32.totalorder %s88_s10, %s2767_s21  ;;  %p2773_p3 = scmp.lt.s32.totalorder %s2767_s21, %s2767_s21 }
  0x62   :  { %p2774_p4 = por %p2773_p3, %p2772_p2 }
  0x64   :  { %p2775_p5 = pnand %p2774_p4, %p2768_p1 }
  0x66   :  { %2778 = shalt.err (!%p2775_p5)
}
  0x67   :  { %93 = dma.hbm_to_vmem [thread:$0]  %s3191_s7, 4096, %s88_s10, [#allocation13], %s2815_s1, %s2815_s1, %s2816_s28  }
  0x68   :  { %2801 = dma.done.wait [#allocation4], 256  }
  0x69   :  { %2802 = vsyncadd [#allocation4], 4294967040 }
  0x6a   :  { %2803 = dma.done.wait [#allocation7], 3328  }
  0x6b   :  { %2804 = vsyncadd [#allocation7], 4294963968 }
  0x6c   :  { %2805 = dma.done.wait [#allocation10], 5120  }
  0x6d   :  { %2806 = vsyncadd [#allocation10], 4294962176 }
  0x6e   :  { %2807 = dma.done.wait [#allocation13], 4096  }
  0x6f   :  { %2808 = vsyncadd [#allocation13], 4294963200  ;;  %v2825_v0 = vmov 0   ;;  %v2826_v1 = vmov 0.0   ;;  %vm2827_vm0 = vmmov 0   ;;  %v2981_v23 = vld [vmem:[#allocation3] sm:$0xff] }
  0x70   :  { %308 = vmatprep.mubr.bf16.mxu0 %v2825_v0  ;;  %2285 = vmatprep.subr.bf16.mxu1 %v2826_v1  ;;  %v2471_v2 = vld [vmem:[#allocation8 + $0x4] ss:$12 sps:$4 sm:$0xff]   ;;  %v2473_v3 = vld [vmem:[#allocation8] ss:$12 sps:$4 sm:$0xff]   ;;  %v2474_v4 = vld [vmem:[#allocation8 + $0x1c] ss:$12 sps:$4 sm:$0xff]  }
  0x71   :  { %2301 = vmatprep.mubr.msk.bf16.mxu1 %vm2827_vm0, %v2826_v1  ;;  %276 = vmatprep.subr.bf16.mxu0 %v2471_v2  ;;  %v2476_v5 = vld [vmem:[#allocation8 + $0x18] ss:$12 sps:$4 sm:$0xff]   ;;  %v2477_v6 = vld [vmem:[#allocation8 + $0x34] ss:$12 sps:$4 sm:$0xff]   ;;  %v2479_v7 = vld [vmem:[#allocation8 + $0x30] ss:$12 sps:$4 sm:$0xff]  }
  0x72   :  { %277 = vmatpush1.bf16.msra.mxu0 %v2473_v3  ;;  %v2480_v8 = vld [vmem:[#allocation8 + $0x4c] ss:$12 sps:$4 sm:$0xff]   ;;  %v2482_v9 = vld [vmem:[#allocation8 + $0x48] ss:$12 sps:$4 sm:$0xff]   ;;  %v2483_v10 = vld [vmem:[#allocation8 + $0x64] ss:$12 sps:$4 sm:$0xff]  }
  0x73   :  { %278 = vmatprep.subr.bf16.mxu0 %v2474_v4  ;;  %v2495_v11 = vld [vmem:[#allocation8 + $0x8] ss:$12 sps:$4 sm:$0xff]   ;;  %v2496_v12 = vld [vmem:[#allocation8 + $0x20] ss:$12 sps:$4 sm:$0xff]   ;;  %v2488_v15 = vld [vmem:[#allocation8 + $0x78] ss:$12 sps:$4 sm:$0xff]  }
  0x74   :  { %2286 = vmatpush3.bf16.msra.mxu1 %v2495_v11  ;;  %v2485_v13 = vld [vmem:[#allocation8 + $0x60] ss:$12 sps:$4 sm:$0xff]   ;;  %v2486_v14 = vld [vmem:[#allocation8 + $0x7c] ss:$12 sps:$4 sm:$0xff]   ;;  %v2497_v16 = vld [vmem:[#allocation8 + $0x38] ss:$12 sps:$4 sm:$0xff]  }
  0x75   :  { %2287 = vmatprep.subr.bf16.mxu1 %v2826_v1  ;;  %v2489_v17 = vld [vmem:[#allocation8 + $0x94] ss:$12 sps:$4 sm:$0xff]   ;;  %v2498_v18 = vld [vmem:[#allocation8 + $0x50] ss:$12 sps:$4 sm:$0xff]   ;;  %v2492_v20 = vld [vmem:[#allocation8 + $0xac] ss:$12 sps:$4 sm:$0xff]  }
  0x76   :  { %279 = vmatpush1.bf16.msra.mxu0 %v2476_v5  ;;  %v2491_v19 = vld [vmem:[#allocation8 + $0x90] ss:$12 sps:$4 sm:$0xff]   ;;  %v2499_v21 = vld [vmem:[#allocation8 + $0x68] ss:$12 sps:$4 sm:$0xff]   ;;  %v2500_v25 = vld [vmem:[#allocation8 + $0x80] ss:$12 sps:$4 sm:$0xff]  }
  0x77   :  { %280 = vmatprep.subr.bf16.mxu0 %v2477_v6  ;;  %v2494_v22 = vld [vmem:[#allocation8 + $0xa8] ss:$12 sps:$4 sm:$0xff]   ;;  %v2501_v27 = vld [vmem:[#allocation8 + $0x98] ss:$12 sps:$4 sm:$0xff]   ;;  %v2502_v28 = vld [vmem:[#allocation8 + $0xb0] ss:$12 sps:$4 sm:$0xff]  }
  0x78   :  { %2288 = vmatpush3.bf16.msra.mxu1 %v2496_v12  ;;  %v2983_v24 = vld [vmem:[#allocation3 + $0x8] sm:$0xff]  ;;  %vm362_vm1 = vcmask 261120   ;;  %s2828_s7 = smov 96   ;;  %v3023_v47 = vld [vmem:[#allocation6] sm:$0xff]  ;;  %vm454_vm3 = vcmask 130048   ;;  %v3025_v50 = vld [vmem:[#allocation6 + $0x8] sm:$0xff] }
  0x79   :  { %2289 = vmatprep.subr.bf16.mxu1 %v2826_v1  ;;  %v115_v26 = vpack.c.bf16 %v2983_v24, %v2981_v23  ;;  %vm2999_vm2 = vmpackc.low %vm362_vm1, %vm362_vm1  ;;  %s2829_s28 = smov 32   ;;  %vm774_vm4 = vcmask 523520   ;;  %vm989_vm5 = vcmask 785920   ;;  %vm1204_vm6 = vcmask 1048320  }
  0x7a   :  { %281 = vmatpush1.bf16.msra.mxu0 %v2479_v7 }
  0x7b   :  { %282 = vmatprep.subr.bf16.mxu0 %v2480_v8 }
  0x7c   :  { %2290 = vmatpush3.bf16.msra.mxu1 %v2497_v16 }
  0x7d   :  { %2291 = vmatprep.subr.bf16.mxu1 %v2826_v1 }
  0x7e   :  { %283 = vmatpush1.bf16.msra.mxu0 %v2482_v9 }
  0x7f   :  { %284 = vmatprep.subr.bf16.mxu0 %v2483_v10 }
  0x80   :  { %2292 = vmatpush3.bf16.msra.mxu1 %v2498_v18 }
  0x81   :  { %2293 = vmatprep.subr.bf16.mxu1 %v2826_v1 }
  0x82   :  { %285 = vmatpush1.bf16.msra.mxu0 %v2485_v13 }
  0x83   :  { %286 = vmatprep.subr.bf16.mxu0 %v2486_v14 }
  0x84   :  { %2294 = vmatpush3.bf16.msra.mxu1 %v2499_v21 }
  0x85   :  { %2295 = vmatprep.subr.bf16.mxu1 %v2826_v1 }
  0x86   :  { %287 = vmatpush1.bf16.msra.mxu0 %v2488_v15 }
  0x87   :  { %288 = vmatprep.subr.bf16.mxu0 %v2489_v17 }
  0x88   :  { %2296 = vmatpush3.bf16.msra.mxu1 %v2500_v25 }
  0x89   :  { %2297 = vmatprep.subr.bf16.mxu1 %v2826_v1 }
  0x8a   :  { %289 = vmatpush1.bf16.msra.mxu0 %v2491_v19 }
  0x8b   :  { %290 = vmatprep.subr.bf16.mxu0 %v2492_v20 }
  0x8c   :  { %2298 = vmatpush3.bf16.msra.mxu1 %v2501_v27 }
  0x8d   :  { %2299 = vmatprep.subr.bf16.mxu1 %v2826_v1 }
  0x8e   :  { %291 = vmatpush1.bf16.msra.mxu0 %v2494_v22 }
  0x90   :  { %2300 = vmatpush3.bf16.msra.mxu1 %v2502_v28 }
  0x91   :  { %309 = vmatmul.mubr.bf16.vlgmr.msra.gmra.mrb[0].mxu0 %v115_v26 }
  0x93   :  { %2302 = vmatmul.mubr.bf16.vlgmr.msra.gmra.mrb[0].mxu1 %v115_v26 }
 0x164   :  { %v2991_v29 = vpop.f32.mrb[0].mxu0 }
 0x165   :  { %v312_v30 = vpop.f32.mrb[1].mxu0  ;;  %2309 = vmatprep.mubr.msk.f32.mxu0 %vm362_vm1, %v2991_v29 }
 0x166   :  { %v2995_v31 = vpop.f32.mrb[2].mxu0  ;;  %v353_v36 = vpop.f32.mrb[0].mxu1 }
 0x167   :  { %v316_v32 = vpop.f32.mrb[3].mxu0  ;;  %v2303_v37 = vpop.f32.mrb[1].mxu1 }
 0x168   :  { %v2381_v34 = vpack.c.bf16 %v316_v32, %v312_v30  ;;  %v3003_v35 = vpack.i.bf16 %v316_v32, %v312_v30  ;;  %v356_v38 = vpop.f32.mrb[2].mxu1 }
 0x169   :  { %v2387_v39 = vpack.c.bf16 %v356_v38, %v353_v36  ;;  %v2304_v40 = vpop.f32.mrb[3].mxu1  ;;  %v3031_v55 = vpack.i.bf16 %v356_v38, %v353_v36 }
 0x16a   :  { %2442 = vrot.lane.b32.xlu1 %v3003_v35, %s2828_s7  ;;  %2383 = vmatprep.subr.msk.bf16.mxu0 %vm2999_vm2, %v2381_v34 }
 0x16b   :  { %2386 = vmatpush3.bf16.xpose.msk.msra.mxu0 %vm2999_vm2, %v2381_v34 }
 0x16c   :  { %2388 = vmatprep.subr.bf16.mxu0 %v2387_v39 }
 0x16e   :  { %2447 = vrot.lane.b32.xlu1 %v3003_v35, %s2815_s1 }
 0x172   :  { %562 = vrot.lane.b32.xlu1 %v2995_v31, %s2828_s7  ;;  %2310 = vmatmul.mubr.msk.f32.vlgmr.msra.gmra.mrb[4].mxu0 %vm362_vm1, %v2995_v31 }
 0x173   :  { %2390 = vmatpush3.bf16.msra.mxu0 %v2387_v39 }
 0x176   :  { %777 = vrot.lane.b32.xlu1 %v2991_v29, %s2815_s1 }
 0x17a   :  { %779 = vrot.lane.b32.xlu1 %v2995_v31, %s2815_s1 }
 0x17e   :  { %2452 = vrot.lane.b32.xlu1 %v3031_v55, %s2815_s1 }
 0x1dc   :  { %v2443_v41 = vpop.permute.xlu1 %2442 }
 0x1dd   :  { %v2445_v42 = vunpack.i.h.bf16 %v2443_v41  ;;  %v2444_v43 = vunpack.i.l.bf16 %v2443_v41 }
 0x1df   :  { %v2391_v44 = vpack.c.bf16 %v2445_v42, %v2444_v43 }
 0x1e0   :  { %v2448_v56 = vpop.permute.xlu1 %2447 }
 0x1e1   :  { %2393 = vmatprep.subr.msk.bf16.mxu0 %vm2999_vm2, %v2391_v44  ;;  %v2450_v5 = vunpack.i.h.bf16 %v2448_v56  ;;  %v2449_v6 = vunpack.i.l.bf16 %v2448_v56 }
 0x1e3   :  { %v2401_v9 = vpack.c.bf16 %v2450_v5, %v2449_v6 }
 0x1e4   :  { %v563_v59 = vpop.permute.xlu1 %562 }
 0x1e8   :  { %v778_v2 = vpop.permute.xlu1 %777 }
 0x1ec   :  { %v780_v4 = vpop.permute.xlu1 %779 }
 0x1f0   :  { %v2453_v8 = vpop.permute.xlu1 %2452 }
 0x1f1   :  { %v2455_v11 = vunpack.i.h.bf16 %v2453_v8  ;;  %v2454_v12 = vunpack.i.l.bf16 %v2453_v8 }
 0x1f3   :  { %v2407_v13 = vpack.c.bf16 %v2455_v11, %v2454_v12 }
 0x245   :  { %v2311_v45 = vpop.f32.mrb[4].mxu0 }
 0x246   :  { %v441_v46 = vpop.f32.mrb[5].mxu0  ;;  %v451_v48 = vmul.f32 0.17677669, %v2311_v45 }
 0x247   :  { %v450_v49 = vmul.f32 0.17677669, %v441_v46 }
 0x248   :  { %v453_v53 = vadd.f32 %v451_v48, %v3025_v50 }
 0x249   :  { %v452_v51 = vadd.f32 %v450_v49, %v3023_v47 }
 0x24a   :  { %v458_v54 = vsel %vm454_vm3, %v453_v53, -inf }
 0x24b   :  { %v455_v52 = vsel %vm454_vm3, %v452_v51, -inf }
 0x24c   :  { %456 = vmax.xlane.f32.xlu0 %v455_v52 }
 0x250   :  { %459 = vmax.xlane.f32.xlu0 %v458_v54 }
 0x266   :  { %560 = vrot.lane.b32.xlu0 %v2991_v29, %s2828_s7 }
 0x2d9   :  { %v457_v57 = vpop.xlane.xlu0 %456 }
 0x2da   :  { %v461_v58 = vsub.f32 %v452_v51, %v457_v57 }
 0x2dc   :  { %v463_v60 = vmul.f32 1.442695, %v461_v58 }
 0x2dd   :  { %v460_v61 = vpop.xlane.xlu0 %459 }
 0x2de   :  { %2591 = vpow2.f32 %v463_v60  ;;  %v462_v62 = vsub.f32 %v453_v53, %v460_v61 }
 0x2e0   :  { %v465_v63 = vmul.f32 1.442695, %v462_v62 }
 0x2e1   :  { %v561_v10 = vpop.permute.xlu0 %560 }
 0x2e2   :  { %2593 = vpow2.f32 %v465_v63 }
 0x2e8   :  { %v3037_v3 = vpop.eup %2591 }
 0x2e9   :  { %2316 = vmatprep.mubr.msk.f32.mxu0 %vm454_vm3, %v3037_v3 }
 0x2ec   :  { %v3041_v7 = vpop.eup %2593 }
 0x2ed   :  { %2317 = vmatmul.mubr.msk.f32.vlgmr.msra.gmra.mrb[6].mxu0 %vm454_vm3, %v3041_v7 }
 0x2ee   :  { %2396 = vmatpush3.bf16.xpose.msk.msra.mxu0 %vm2999_vm2, %v2391_v44  ;;  %2323 = vmatprep.mubr.msk.f32.mxu0 %vm362_vm1, %v561_v10 }
 0x2ef   :  { %2403 = vmatprep.subr.msk.bf16.mxu0 %vm2999_vm2, %v2401_v9 }
 0x2f5   :  { %2324 = vmatmul.mubr.msk.f32.vlgmr.msra.gmra.mrb[8].mxu0 %vm362_vm1, %v563_v59 }
 0x2f6   :  { %2406 = vmatpush3.bf16.xpose.msk.msra.mxu0 %vm2999_vm2, %v2401_v9  ;;  %2337 = vmatprep.mubr.msk.f32.mxu0 %vm362_vm1, %v778_v2 }
 0x2f7   :  { %2408 = vmatprep.subr.bf16.mxu0 %v2407_v13 }
 0x2fd   :  { %2338 = vmatmul.mubr.msk.f32.vlgmr.msra.gmra.mrb[10].mxu0 %vm362_vm1, %v780_v4 }
 0x2fe   :  { %2410 = vmatpush3.bf16.msra.mxu0 %v2407_v13 }
 0x3c0   :  { %v3055_v14 = vpop.f32.mrb[6].mxu0 }
 0x3c1   :  { %v3057_v15 = vpop.f32.mrb[7].mxu0 }
 0x3c8   :  { %v2325_v16 = vpop.f32.mrb[8].mxu0 }
 0x3c9   :  { %v642_v17 = vpop.f32.mrb[9].mxu0  ;;  %v652_v28 = vmul.f32 0.17677669, %v2325_v16 }
 0x3ca   :  { %v651_v32 = vmul.f32 0.17677669, %v642_v17 }
 0x3cb   :  { %v654_v30 = vadd.f32 %v652_v28, %v3025_v50 }
 0x3cc   :  { %v653_v36 = vadd.f32 %v651_v32, %v3023_v47 }
 0x3cd   :  { %v658_v34 = vsel %vm454_vm3, %v654_v30, -inf }
 0x3ce   :  { %v655_v37 = vsel %vm454_vm3, %v653_v36, -inf }
 0x3d0   :  { %v2339_v18 = vpop.f32.mrb[10].mxu0 }
 0x3d1   :  { %v869_v19 = vmul.f32 0.17677669, %v2339_v18  ;;  %v859_v20 = vpop.f32.mrb[11].mxu0 }
 0x3d2   :  { %v868_v21 = vmul.f32 0.17677669, %v859_v20 }
 0x3d3   :  { %v871_v22 = vadd.f32 %v869_v19, %v3025_v50 }
 0x3d4   :  { %v870_v25 = vadd.f32 %v868_v21, %v3023_v47 }
 0x3d5   :  { %v875_v26 = vsel %vm454_vm3, %v871_v22, -inf }
 0x3d6   :  { %876 = vmax.xlane.f32.xlu0 %v875_v26  ;;  %v872_v27 = vsel %vm454_vm3, %v870_v25, -inf }
 0x3d7   :  { %873 = vmax.xlane.f32.xlu1 %v872_v27 }
 0x3e8   :  { %992 = vrot.lane.b32.xlu1 %v2991_v29, %s2829_s28 }
 0x3ec   :  { %2457 = vrot.lane.b32.xlu0 %v3003_v35, %s2829_s28  ;;  %994 = vrot.lane.b32.xlu1 %v2995_v31, %s2829_s28 }
 0x40b   :  { %659 = vmax.xlane.f32.xlu0 %v658_v34 }
 0x410   :  { %656 = vmax.xlane.f32.xlu1 %v655_v37  ;;  %v467_v37 = vsel %vm454_vm3, %v3037_v3, 0.0 }
 0x463   :  { %v877_v38 = vpop.xlane.xlu0 %876 }
 0x464   :  { %v879_v29 = vsub.f32 %v871_v22, %v877_v38  ;;  %v874_v39 = vpop.xlane.xlu1 %873 }
 0x465   :  { %v878_v40 = vsub.f32 %v870_v25, %v874_v39 }
 0x466   :  { %v882_v35 = vmul.f32 1.442695, %v879_v29 }
 0x467   :  { %v880_v41 = vmul.f32 1.442695, %v878_v40  ;;  %v2458_v42 = vpop.permute.xlu0 %2457 }
 0x468   :  { %v2460_v31 = vunpack.i.h.bf16 %v2458_v42  ;;  %v2459_v43 = vunpack.i.l.bf16 %v2458_v42  ;;  %v993_v48 = vpop.permute.xlu1 %992  ;;  %v2505_v42 = vld [vmem:[#allocation9 + $0x10] sm:$0xff]  }
 0x469   :  { %2595 = vpow2.f32 %v880_v41  ;;  %v2504_v41 = vld [vmem:[#allocation9 + $0x8] sm:$0xff]  }
 0x46a   :  { %2597 = vpow2.f32 %v882_v35  ;;  %v2411_v44 = vpack.c.bf16 %v2460_v31, %v2459_v43  ;;  %v2503_v35 = vld [vmem:[#allocation9] sm:$0xff]  }
 0x46c   :  { %2413 = vmatprep.subr.msk.bf16.mxu0 %vm2999_vm2, %v2411_v44  ;;  %v995_v49 = vpop.permute.xlu1 %994 }
 0x473   :  { %v2596_v45 = vpop.eup %2595 }
 0x474   :  { %v2598_v46 = vpop.eup %2597  ;;  %2344 = vmatprep.mubr.msk.f32.mxu0 %vm454_vm3, %v2596_v45  ;;  %v884_v10 = vsel %vm454_vm3, %v2596_v45, 0.0 }
 0x475   :  { %2345 = vmatmul.mubr.msk.f32.vlgmr.msra.gmra.mrb[12].mxu0 %vm454_vm3, %v2598_v46  ;;  %v887_v9 = vsel %vm454_vm3, %v2598_v46, 0.0 }
 0x476   :  { %2416 = vmatpush3.bf16.xpose.msk.msra.mxu0 %vm2999_vm2, %v2411_v44  ;;  %2351 = vmatprep.mubr.msk.f32.mxu0 %vm362_vm1, %v993_v48 }
 0x47d   :  { %2352 = vmatmul.mubr.msk.f32.vlgmr.msra.gmra.mrb[14].mxu0 %vm362_vm1, %v995_v49 }
 0x47e   :  { %1583 = vmatprep.mubr.bf16.mxu0 %v2825_v0 }
 0x498   :  { %v660_v4 = vpop.xlane.xlu0 %659 }
 0x499   :  { %v662_v5 = vsub.f32 %v654_v30, %v660_v4 }
 0x49b   :  { %v665_v6 = vmul.f32 1.442695, %v662_v5 }
 0x49d   :  { %v657_v51 = vpop.xlane.xlu1 %656 }
 0x49e   :  { %v661_v52 = vsub.f32 %v653_v36, %v657_v51  ;;  %v470_v36 = vsel %vm454_vm3, %v3041_v7, 0.0 }
 0x4a0   :  { %v663_v53 = vmul.f32 1.442695, %v661_v52  ;;  %v2506_v52 = vld [vmem:[#allocation9 + $0x18] sm:$0xff]  }
 0x4a2   :  { %2599 = vpow2.f32 %v663_v53  ;;  %v2507_v53 = vld [vmem:[#allocation9 + $0x20] sm:$0xff]  }
 0x4a3   :  { %2601 = vpow2.f32 %v665_v6 }
 0x4ac   :  { %v2600_v54 = vpop.eup %2599 }
 0x4ad   :  { %2330 = vmatprep.mubr.msk.f32.mxu1 %vm454_vm3, %v2600_v54  ;;  %v2602_v8 = vpop.eup %2601 }
 0x548   :  { %v3083_v56 = vpop.f32.mrb[12].mxu0 }
 0x549   :  { %v3085_v57 = vpop.f32.mrb[13].mxu0 }
 0x550   :  { %v2353_v33 = vpop.f32.mrb[14].mxu0 }
 0x551   :  { %v1084_v58 = vmul.f32 0.17677669, %v2353_v33  ;;  %v1074_v59 = vpop.f32.mrb[15].mxu0 }
 0x552   :  { %v1083_v60 = vmul.f32 0.17677669, %v1074_v59 }
 0x553   :  { %v1086_v61 = vadd.f32 %v1084_v58, %v3025_v50  ;;  %v667_v50 = vsel %vm454_vm3, %v2600_v54, 0.0  ;;  %v2508_v54 = vld [vmem:[#allocation9 + $0x28] sm:$0xff]  }
 0x554   :  { %v1085_v62 = vadd.f32 %v1083_v60, %v3023_v47  ;;  %v670_v47 = vsel %vm454_vm3, %v2602_v8, 0.0 }
 0x555   :  { %v1090_v63 = vsel %vm454_vm3, %v1086_v61, -inf }
 0x556   :  { %1091 = vmax.xlane.f32.xlu1 %v1090_v63  ;;  %v1087_v2 = vsel %vm454_vm3, %v1085_v62, -inf }
 0x557   :  { %1088 = vmax.xlane.f32.xlu0 %v1087_v2 }
 0x567   :  { %2467 = vrot.lane.b32.xlu1 %v3031_v55, %s2829_s28 }
 0x56d   :  { %2462 = vrot.lane.b32.xlu0 %v3031_v55, %s2828_s7 }
 0x58b   :  { %668 = vadd.xlane.f32.xlu1 %v667_v50 }
 0x58c   :  { %671 = vadd.xlane.f32.xlu0 %v670_v47 }
 0x58f   :  { %888 = vadd.xlane.f32.xlu1 %v887_v9 }
 0x590   :  { %885 = vadd.xlane.f32.xlu0 %v884_v10 }
 0x5e3   :  { %v1092_v11 = vpop.xlane.xlu1 %1091 }
 0x5e4   :  { %v1094_v12 = vsub.f32 %v1086_v61, %v1092_v11  ;;  %v1089_v55 = vpop.xlane.xlu0 %1088 }
 0x5e5   :  { %v1093_v13 = vsub.f32 %v1085_v62, %v1089_v55  ;;  %v2510_v62 = vld [vmem:[#allocation9 + $0x38] sm:$0xff]  }
 0x5e6   :  { %v1097_v16 = vmul.f32 1.442695, %v1094_v12 }
 0x5e7   :  { %v1095_v17 = vmul.f32 1.442695, %v1093_v13  ;;  %v2468_v18 = vpop.permute.xlu1 %2467 }
 0x5e8   :  { %2603 = vpow2.f32 %v1097_v16  ;;  %v2470_v19 = vunpack.i.h.bf16 %v2468_v18  ;;  %v2463_v20 = vpop.permute.xlu0 %2462  ;;  %v2469_v21 = vunpack.i.l.bf16 %v2468_v18 }
 0x5e9   :  { %2605 = vpow2.f32 %v1095_v17  ;;  %v2465_v22 = vunpack.i.h.bf16 %v2463_v20  ;;  %v2464_v25 = vunpack.i.l.bf16 %v2463_v20 }
 0x5ea   :  { %v2417_v27 = vpack.c.bf16 %v2470_v19, %v2469_v21 }
 0x5eb   :  { %v2397_v26 = vpack.c.bf16 %v2465_v22, %v2464_v25  ;;  %v2511_v22 = vld [vmem:[#allocation11] ss:$16 sps:$4 sm:$0xff]   ;;  %v2513_v25 = vld [vmem:[#allocation11 + $0x4] ss:$16 sps:$4 sm:$0xff]  }
 0x5ec   :  { %1551 = vmatprep.subr.bf16.mxu0 %v2513_v25  ;;  %v2567_v25 = vld [vmem:[#allocation12 + $0x50] sm:$0xff]  }
 0x5ed   :  { %2398 = vmatprep.subr.bf16.mxu1 %v2397_v26  ;;  %1552 = vmatpush1.bf16.msra.mxu0 %v2511_v22  ;;  %v2566_v22 = vld [vmem:[#allocation12 + $0x88] sm:$0xff]  }
 0x5ee   :  { %2400 = vmatpush3.bf16.msra.mxu1 %v2397_v26  ;;  %v2514_v26 = vld [vmem:[#allocation11 + $0x8] ss:$16 sps:$4 sm:$0xff]  }
 0x5ef   :  { %2418 = vmatprep.subr.bf16.mxu1 %v2417_v27 }
 0x5f1   :  { %2331 = vmatmul.mubr.msk.f32.vlgmr.msra.gmra.mrb[4].mxu1 %vm454_vm3, %v2602_v8 }
 0x5f2   :  { %v2604_v28 = vpop.eup %2603  ;;  %2420 = vmatpush3.bf16.msra.mxu1 %v2417_v27  ;;  %v2516_v27 = vld [vmem:[#allocation11 + $0xc] ss:$16 sps:$4 sm:$0xff]  }
 0x5f3   :  { %v2606_v30 = vpop.eup %2605  ;;  %v1102_v32 = vsel %vm454_vm3, %v2604_v28, 0.0  ;;  %2361 = vmatprep.subr.bf16.mxu1 %v2826_v1 }
 0x5f4   :  { %2358 = vmatprep.mubr.msk.f32.mxu1 %vm454_vm3, %v2606_v30  ;;  %1103 = vadd.xlane.f32.xlu1 %v1102_v32  ;;  %v1099_v34 = vsel %vm454_vm3, %v2606_v30, 0.0  ;;  %v2522_v30 = vld [vmem:[#allocation11 + $0x2c] ss:$16 sps:$4 sm:$0xff]  }
 0x5f5   :  { %1100 = vadd.xlane.f32.xlu0 %v1099_v34  ;;  %2359 = vmatmul.mubr.msk.f32.vlgmr.msra.gmra.mrb[6].mxu1 %vm454_vm3, %v2604_v28  ;;  %v2519_v28 = vld [vmem:[#allocation11 + $0x24] ss:$16 sps:$4 sm:$0xff]  }
 0x5f6   :  { %2377 = vmatprep.mubr.msk.bf16.mxu1 %vm2827_vm0, %v2826_v1  ;;  %2362 = vmatpush3.bf16.msra.mxu1 %v2503_v35  ;;  %v2528_v35 = vld [vmem:[#allocation11 + $0x4c] ss:$16 sps:$4 sm:$0xff]  }
 0x5f7   :  { %2363 = vmatprep.subr.bf16.mxu1 %v2826_v1  ;;  %1553 = vmatprep.subr.bf16.mxu0 %v2519_v28  ;;  %v2570_v28 = vld [vmem:[#allocation12 + $0x90] sm:$0xff]  }
 0x5f8   :  { %471 = vadd.xlane.f32.xlu1 %v470_v36 }
 0x5f9   :  { %468 = vadd.xlane.f32.xlu0 %v467_v37 }
 0x5fa   :  { %2364 = vmatpush3.bf16.msra.mxu1 %v2504_v41  ;;  %v2523_v41 = vld [vmem:[#allocation11 + $0x40] ss:$16 sps:$4 sm:$0xff]  }
 0x5fb   :  { %2365 = vmatprep.subr.bf16.mxu1 %v2826_v1 }
 0x5fe   :  { %2366 = vmatpush3.bf16.msra.mxu1 %v2505_v42  ;;  %v2526_v42 = vld [vmem:[#allocation11 + $0x48] ss:$16 sps:$4 sm:$0xff]  }
 0x5ff   :  { %2367 = vmatprep.subr.bf16.mxu1 %v2826_v1 }
 0x602   :  { %2368 = vmatpush3.bf16.msra.mxu1 %v2506_v52  ;;  %v2541_v52 = vld [vmem:[#allocation11 + $0xa0] ss:$16 sps:$4 sm:$0xff]  }
 0x603   :  { %2369 = vmatprep.subr.bf16.mxu1 %v2826_v1 }
 0x606   :  { %2370 = vmatpush3.bf16.msra.mxu1 %v2507_v53  ;;  %v2544_v53 = vld [vmem:[#allocation11 + $0xa8] ss:$16 sps:$4 sm:$0xff]  }
 0x607   :  { %2371 = vmatprep.subr.bf16.mxu1 %v2826_v1 }
 0x60a   :  { %2372 = vmatpush3.bf16.msra.mxu1 %v2508_v54  ;;  %v2549_v54 = vld [vmem:[#allocation11 + $0xc4] ss:$16 sps:$4 sm:$0xff]  }
 0x60b   :  { %2373 = vmatprep.subr.bf16.mxu1 %v2826_v1 }
 0x618   :  { %v669_v38 = vpop.xlane.xlu1 %668 }
 0x619   :  { %v672_v3 = vpop.xlane.xlu0 %671 }
 0x61c   :  { %v889_v29 = vpop.xlane.xlu1 %888 }
 0x61d   :  { %2607 = vrcp.f32 %v889_v29  ;;  %v886_v7 = vpop.xlane.xlu0 %885 }
 0x627   :  { %v2608_v39 = vpop.eup %2607 }
 0x628   :  { %v980_v40 = vmul.f32 %v2608_v39, %v3083_v56 }
 0x681   :  { %v1104_v31 = vpop.xlane.xlu1 %1103 }
 0x682   :  { %v1101_v43 = vpop.xlane.xlu0 %1100 }
 0x685   :  { %v472_v44 = vpop.xlane.xlu1 %471 }
 0x686   :  { %2609 = vrcp.f32 %v472_v44  ;;  %v469_v45 = vpop.xlane.xlu0 %468  ;;  %v2537_v44 = vld [vmem:[#allocation11 + $0x84] ss:$16 sps:$4 sm:$0xff]  }
 0x687   :  { %2611 = vrcp.f32 %v469_v45  ;;  %v2540_v45 = vld [vmem:[#allocation11 + $0x8c] ss:$16 sps:$4 sm:$0xff]  }
 0x688   :  { %2613 = vrcp.f32 %v672_v3  ;;  %v2531_v3 = vld [vmem:[#allocation11 + $0x64] ss:$16 sps:$4 sm:$0xff]  }
 0x689   :  { %2615 = vrcp.f32 %v669_v38 }
 0x68a   :  { %2617 = vrcp.f32 %v886_v7  ;;  %v2534_v7 = vld [vmem:[#allocation11 + $0x6c] ss:$16 sps:$4 sm:$0xff]  }
 0x68b   :  { %2619 = vrcp.f32 %v1104_v31  ;;  %v2529_v31 = vld [vmem:[#allocation11 + $0x60] ss:$16 sps:$4 sm:$0xff]  }
 0x68c   :  { %2621 = vrcp.f32 %v1101_v43  ;;  %v2532_v43 = vld [vmem:[#allocation11 + $0x68] ss:$16 sps:$4 sm:$0xff]  }
 0x690   :  { %v2610_v46 = vpop.eup %2609 }
 0x691   :  { %v2612_v48 = vpop.eup %2611  ;;  %v557_v49 = vmul.f32 %v2610_v46, %v3055_v14  ;;  %v2509_v14 = vld [vmem:[#allocation9 + $0x30] sm:$0xff]  }
 0x692   :  { %v556_v51 = vmul.f32 %v2612_v48, %v3057_v15  ;;  %v2614_v15 = vpop.eup %2613  ;;  %2374 = vmatpush3.bf16.msra.mxu1 %v2509_v14  ;;  %v2535_v46 = vld [vmem:[#allocation11 + $0x80] ss:$16 sps:$4 sm:$0xff]   ;;  %v2538_v48 = vld [vmem:[#allocation11 + $0x88] ss:$16 sps:$4 sm:$0xff]   ;;  %v2552_v14 = vld [vmem:[#allocation11 + $0xcc] ss:$16 sps:$4 sm:$0xff]  }
 0x693   :  { %559 = vst.msk [vmem:[#allocation2 + $0x8] sm:$0xff] %vm362_vm1, %v557_v49  ;;  %v2616_v33 = vpop.eup %2615  ;;  %2375 = vmatprep.subr.bf16.mxu1 %v2826_v1  ;;  %v2543_v49 = vld [vmem:[#allocation11 + $0xa4] ss:$16 sps:$4 sm:$0xff]  }
 0x694   :  { %558 = vst.msk [vmem:[#allocation2] sm:$0xff] %vm362_vm1, %v556_v51  ;;  %v2618_v60 = vpop.eup %2617  ;;  %v2546_v51 = vld [vmem:[#allocation11 + $0xac] ss:$16 sps:$4 sm:$0xff]  }
 0x695   :  { %v2620_v63 = vpop.eup %2619  ;;  %v979_v6 = vmul.f32 %v2618_v60, %v3085_v57  ;;  %v2558_v60 = vld [vmem:[#allocation11 + $0xec] ss:$16 sps:$4 sm:$0xff]  }
 0x696   :  { %2376 = vmatpush3.bf16.msra.mxu1 %v2510_v62  ;;  %v2622_v8 = vpop.eup %2621  ;;  %v2560_v62 = vld [vmem:[#allocation12 + $0xc0] sm:$0xff]  }
 0x697   :  { %1594 = vmatprep.subr.bf16.mxu1 %v2516_v27  ;;  %v2569_v27 = vld [vmem:[#allocation12 + $0x10] sm:$0xff]  }
 0x6c4   :  { %v2332_v56 = vpop.f32.mrb[4].mxu1 }
 0x6c5   :  { %v765_v58 = vmul.f32 %v2614_v15, %v2332_v56  ;;  %v753_v59 = vpop.f32.mrb[5].mxu1  ;;  %v2547_v15 = vld [vmem:[#allocation11 + $0xc0] ss:$16 sps:$4 sm:$0xff]   ;;  %v2550_v56 = vld [vmem:[#allocation11 + $0xc8] ss:$16 sps:$4 sm:$0xff]  }
 0x6c6   :  { %v764_v61 = vmul.f32 %v2616_v33, %v753_v59  ;;  %v2555_v33 = vld [vmem:[#allocation11 + $0xe4] ss:$16 sps:$4 sm:$0xff]   ;;  %v2556_v59 = vld [vmem:[#allocation11 + $0xe8] ss:$16 sps:$4 sm:$0xff]  }
 0x6c7   :  { %770 = vrot.lane.b32.xlu1 %v765_v58, %s2829_s28  ;;  %v2553_v58 = vld [vmem:[#allocation11 + $0xe0] ss:$16 sps:$4 sm:$0xff]  }
 0x6c8   :  { %768 = vrot.lane.b32.xlu0 %v764_v61, %s2829_s28  ;;  %v2360_v2 = vpop.f32.mrb[6].mxu1  ;;  %v2559_v61 = vld [vmem:[#allocation12 + $0x40] sm:$0xff]  }
 0x6c9   :  { %v1195_v4 = vmul.f32 %v2620_v63, %v2360_v2  ;;  %v1183_v5 = vpop.f32.mrb[7].mxu1 }
 0x6ca   :  { %v1194_v50 = vmul.f32 %v2622_v8, %v1183_v5 }
 0x6cb   :  { %983 = vrot.lane.b32.xlu1 %v979_v6, %s2815_s1 }
 0x6cc   :  { %985 = vrot.lane.b32.xlu0 %v980_v40, %s2815_s1  ;;  %v2525_v40 = vld [vmem:[#allocation11 + $0x44] ss:$16 sps:$4 sm:$0xff]  }
 0x6cf   :  { %1198 = vrot.lane.b32.xlu1 %v1194_v50, %s2828_s7 }
 0x6d0   :  { %1200 = vrot.lane.b32.xlu0 %v1195_v4, %s2828_s7 }
 0x739   :  { %v771_v1 = vpop.permute.xlu1 %770 }
 0x73a   :  { %776 = vst.msk [vmem:[#allocation2 + $0x8] sm:$0xff] %vm774_vm4, %v771_v1  ;;  %v769_v47 = vpop.permute.xlu0 %768  ;;  %v3144_v1 = vld [vmem:[%s3188_s4] ss:$0 sm:$0xff]  ;;  %s2830_s4 = smov [#allocation14]  }
 0x73b   :  { %775 = vst.msk [vmem:[#allocation2] sm:$0xff] %vm774_vm4, %v769_v47 }
 0x73d   :  { %v984_v9 = vpop.permute.xlu1 %983 }
 0x73e   :  { %990 = vst.msk [vmem:[#allocation2] sm:$0xff] %vm989_vm5, %v984_v9  ;;  %v986_v57 = vpop.permute.xlu0 %985 }
 0x73f   :  { %991 = vst.msk [vmem:[#allocation2 + $0x8] sm:$0xff] %vm989_vm5, %v986_v57 }
 0x741   :  { %v1199_v10 = vpop.permute.xlu1 %1198 }
 0x742   :  { %1205 = vst.msk [vmem:[#allocation2] sm:$0xff] %vm1204_vm6, %v1199_v10  ;;  %v1201_v11 = vpop.permute.xlu0 %1200 }
 0x743   :  { %1206 = vst.msk [vmem:[#allocation2 + $0x8] sm:$0xff] %vm1204_vm6, %v1201_v11  ;;  %v3152_v11 = vld [vmem:[%s3189_s5] ss:$0 sm:$0xff]  ;;  %s2054_s5 = sshll.u32 %s2830_s4, 4  ;;  %s2055_s5 = int_to_ptr.vmem [resolvable:$true] %s2054_s5 }
 0x744   :  { %s2779_s30 = scalar_lea.vmem %s2055_s5, 256  ;;  %p2784_p7 = scmp.lt.s32.totalorder %s2055_s5, %s2055_s5 }
 0x745   :  { %p2780_p6 = scmp.ne.s32.totalorder %s2055_s5, %s2779_s30  ;;  %p2785_p8 = scmp.lt.s32.totalorder %s2779_s30, %s2779_s30 }
 0x747   :  { %p2786_p9 = por %p2785_p8, %p2784_p7 }
 0x749   :  { %v1207_v12 = vld [vmem:[#allocation2] sm:$0xff]  ;;  %p2787_p10 = pnand %p2786_p9, %p2780_p6 }
 0x74a   :  { %v1208_v55 = vld [vmem:[#allocation2 + $0x8] sm:$0xff] }
 0x74b   :  { %v1209_v13 = vpack.c.bf16 %v1208_v55, %v1207_v12 }
 0x74d   :  { %2378 = vmatmul.mubr.bf16.vlgmr.msra.gmra.mrb[8].mxu1 %v1209_v13 }
 0x74e   :  { %1626 = vmatprep.mubr.bf16.mxu1 %v2825_v0  ;;  %v2517_v0 = vld [vmem:[#allocation11 + $0x20] ss:$16 sps:$4 sm:$0xff]   ;;  %1595 = vmatpush1.bf16.msra.mxu1 %v2514_v26 }
 0x74f   :  { %1596 = vmatprep.subr.bf16.mxu1 %v2522_v30  ;;  %1554 = vmatpush1.bf16.msra.mxu0 %v2517_v0  ;;  %v2568_v26 = vld [vmem:[#allocation12 + $0xd0] sm:$0xff]   ;;  %v2571_v30 = vld [vmem:[#allocation12 + $0x58] sm:$0xff]  }
 0x750   :  { %1555 = vmatprep.subr.bf16.mxu0 %v2525_v40  ;;  %v2572_v0 = vld [vmem:[#allocation12 + $0xd8] sm:$0xff]   ;;  %v2582_v40 = vld [vmem:[#allocation12 + $0xa8] sm:$0xff]  }
 0x753   :  { %1556 = vmatpush1.bf16.msra.mxu0 %v2523_v41  ;;  %v2584_v41 = vld [vmem:[#allocation12 + $0xf0] sm:$0xff]  }
 0x754   :  { %1557 = vmatprep.subr.bf16.mxu0 %v2531_v3  ;;  %v2586_v3 = vld [vmem:[#allocation12 + $0xb0] sm:$0xff]  }
 0x757   :  { %1558 = vmatpush1.bf16.msra.mxu0 %v2529_v31  ;;  %v2588_v31 = vld [vmem:[#allocation12 + $0xf8] sm:$0xff]  }
 0x758   :  { %1559 = vmatprep.subr.bf16.mxu0 %v2537_v44  ;;  %v2590_v44 = vld [vmem:[#allocation12 + $0xb8] sm:$0xff]  }
 0x75b   :  { %1560 = vmatpush1.bf16.msra.mxu0 %v2535_v46 }
 0x75c   :  { %1561 = vmatprep.subr.bf16.mxu0 %v2543_v49 }
 0x75f   :  { %1562 = vmatpush1.bf16.msra.mxu0 %v2541_v52 }
 0x760   :  { %1563 = vmatprep.subr.bf16.mxu0 %v2549_v54 }
 0x763   :  { %1564 = vmatpush1.bf16.msra.mxu0 %v2547_v15 }
 0x764   :  { %1565 = vmatprep.subr.bf16.mxu0 %v2555_v33 }
 0x767   :  { %1566 = vmatpush1.bf16.msra.mxu0 %v2553_v58 }
 0x768   :  { %2241 = vmatprep.subr.bf16.mxu0 %v2559_v61 }
 0x820   :  { %v1308_v16 = vpop.f32.mrb[8].mxu1 }
 0x821   :  { %v1317_v17 = vadd.f32 %v1308_v16, %v2981_v23  ;;  %v2379_v18 = vpop.f32.mrb[9].mxu1  ;;  %v2520_v23 = vld [vmem:[#allocation11 + $0x28] ss:$16 sps:$4 sm:$0xff]   ;;  %v2561_v16 = vld [vmem:[#allocation12] sm:$0xff]  }
 0x822   :  { %v1311_v19 = vpop.f32.mrb[10].mxu1  ;;  %1597 = vmatpush1.bf16.msra.mxu1 %v2520_v23  ;;  %v2573_v23 = vld [vmem:[#allocation12 + $0x18] sm:$0xff]  }
 0x823   :  { %v1318_v20 = vadd.f32 %v1311_v19, %v2983_v24  ;;  %1319 = vadd.xlane.f32.xlu1 %v1317_v17  ;;  %v2380_v21 = vpop.f32.mrb[11].mxu1  ;;  %1598 = vmatprep.subr.bf16.mxu1 %v2528_v35  ;;  %v2563_v19 = vld [vmem:[#allocation12 + $0x48] sm:$0xff]   ;;  %v2583_v35 = vld [vmem:[#allocation12 + $0x70] sm:$0xff]  }
 0x824   :  { %v2565_v21 = vld [vmem:[#allocation12 + $0x8] sm:$0xff]  }
 0x825   :  { %1321 = vadd.xlane.f32.xlu0 %v1318_v20 }
 0x826   :  { %1599 = vmatpush1.bf16.msra.mxu1 %v2526_v42  ;;  %v2585_v42 = vld [vmem:[#allocation12 + $0x30] sm:$0xff]  }
 0x827   :  { %1600 = vmatprep.subr.bf16.mxu1 %v2534_v7  ;;  %v2587_v7 = vld [vmem:[#allocation12 + $0x78] sm:$0xff]  }
 0x82a   :  { %1601 = vmatpush1.bf16.msra.mxu1 %v2532_v43  ;;  %v2589_v43 = vld [vmem:[#allocation12 + $0x38] sm:$0xff]  }
 0x82b   :  { %1602 = vmatprep.subr.bf16.mxu1 %v2540_v45 }
 0x82e   :  { %1603 = vmatpush1.bf16.msra.mxu1 %v2538_v48 }
 0x82f   :  { %1604 = vmatprep.subr.bf16.mxu1 %v2546_v51 }
 0x832   :  { %1605 = vmatpush1.bf16.msra.mxu1 %v2544_v53 }
 0x833   :  { %1606 = vmatprep.subr.bf16.mxu1 %v2552_v14 }
 0x836   :  { %1607 = vmatpush1.bf16.msra.mxu1 %v2550_v56 }
 0x837   :  { %1608 = vmatprep.subr.bf16.mxu1 %v2558_v60 }
 0x83a   :  { %1609 = vmatpush1.bf16.msra.mxu1 %v2556_v59 }
 0x83b   :  { %2263 = vmatprep.subr.bf16.mxu1 %v2560_v62 }
 0x8b0   :  { %v1320_v24 = vpop.xlane.xlu1 %1319 }
 0x8b1   :  { %v1324_v32 = vmul.f32 0.0078125, %v1320_v24  ;;  %v2574_v24 = vld [vmem:[#allocation12 + $0x98] sm:$0xff]  }
 0x8b2   :  { %v1322_v34 = vpop.xlane.xlu0 %1321 }
 0x8b3   :  { %v3133_v36 = vsub.f32 %v1317_v17, %v1324_v32  ;;  %v1325_v37 = vmul.f32 0.0078125, %v1322_v34  ;;  %v2562_v17 = vld [vmem:[#allocation12 + $0x80] sm:$0xff]  }
 0x8b4   :  { %v2575_v32 = vld [vmem:[#allocation12 + $0x60] sm:$0xff]  }
 0x8b5   :  { %v3135_v38 = vsub.f32 %v1318_v20, %v1325_v37  ;;  %v1328_v29 = vmul.f32 %v3133_v36, %v3133_v36  ;;  %v2564_v20 = vld [vmem:[#allocation12 + $0xc8] sm:$0xff]   ;;  %v2576_v34 = vld [vmem:[#allocation12 + $0xe0] sm:$0xff]  }
 0x8b6   :  { %v2578_v37 = vld [vmem:[#allocation12 + $0xa0] sm:$0xff]  }
 0x8b7   :  { %1330 = vadd.xlane.f32.xlu0 %v1328_v29  ;;  %v1329_v39 = vmul.f32 %v3135_v38, %v3135_v38  ;;  %v2580_v29 = vld [vmem:[#allocation12 + $0xe8] sm:$0xff]  }
 0x8b9   :  { %1332 = vadd.xlane.f32.xlu1 %v1329_v39  ;;  %v2581_v39 = vld [vmem:[#allocation12 + $0x28] sm:$0xff]  }
 0x944   :  { %v1331_v63 = vpop.xlane.xlu0 %1330 }
 0x945   :  { %v1334_v2 = vmul.f32 0.0078125, %v1331_v63 }
 0x946   :  { %v1333_v4 = vpop.xlane.xlu1 %1332 }
 0x947   :  { %v1336_v5 = vadd.f32 1e-05, %v1334_v2  ;;  %v1335_v6 = vmul.f32 0.0078125, %v1333_v4 }
 0x949   :  { %2623 = vrsqrt.f32 %v1336_v5  ;;  %v1337_v8 = vadd.f32 1e-05, %v1335_v6 }
 0x94b   :  { %2625 = vrsqrt.f32 %v1337_v8 }
 0x953   :  { %v2624_v50 = vpop.eup %2623 }
 0x954   :  { %v1340_v47 = vmul.f32 %v2624_v50, %v3133_v36  ;;  %v2577_v36 = vld [vmem:[#allocation12 + $0x20] sm:$0xff]  }
 0x955   :  { %v2626_v9 = vpop.eup %2625 }
 0x956   :  { %v1341_v57 = vmul.f32 %v2626_v9, %v3135_v38  ;;  %v1348_v10 = vmul.f32 %v3144_v1, %v1340_v47  ;;  %v2579_v38 = vld [vmem:[#allocation12 + $0x68] sm:$0xff]  }
 0x958   :  { %v1349_v12 = vmul.f32 %v3144_v1, %v1341_v57  ;;  %v3156_v55 = vadd.f32 %v3152_v11, %v1348_v10 }
 0x95a   :  { %v3159_v13 = vadd.f32 %v3152_v11, %v1349_v12 }
 0x95c   :  { %v1358_v18 = vpack.c.bf16 %v3159_v13, %v3156_v55 }
 0x95e   :  { %1584 = vmatmul.mubr.bf16.vlgmr.msra.gmra.mrb[16].mxu0 %v1358_v18  ;;  %1627 = vmatmul.mubr.bf16.vlgmr.msra.gmra.mrb[12].mxu1 %v1358_v18 }
 0x95f   :  { %2242 = vmatpush3.bf16.msra.mxu0 %v2561_v16  ;;  %2264 = vmatpush3.bf16.msra.mxu1 %v2562_v17 }
 0x960   :  { %2243 = vmatprep.subr.bf16.mxu0 %v2563_v19  ;;  %2265 = vmatprep.subr.bf16.mxu1 %v2564_v20 }
 0x963   :  { %2244 = vmatpush3.bf16.msra.mxu0 %v2565_v21  ;;  %2266 = vmatpush3.bf16.msra.mxu1 %v2566_v22 }
 0x964   :  { %2245 = vmatprep.subr.bf16.mxu0 %v2567_v25  ;;  %2267 = vmatprep.subr.bf16.mxu1 %v2568_v26 }
 0x967   :  { %2246 = vmatpush3.bf16.msra.mxu0 %v2569_v27  ;;  %2268 = vmatpush3.bf16.msra.mxu1 %v2570_v28 }
 0x968   :  { %2247 = vmatprep.subr.bf16.mxu0 %v2571_v30  ;;  %2269 = vmatprep.subr.bf16.mxu1 %v2572_v0 }
 0x96b   :  { %2248 = vmatpush3.bf16.msra.mxu0 %v2573_v23  ;;  %2270 = vmatpush3.bf16.msra.mxu1 %v2574_v24 }
 0x96c   :  { %2249 = vmatprep.subr.bf16.mxu0 %v2575_v32  ;;  %2271 = vmatprep.subr.bf16.mxu1 %v2576_v34 }
 0x96f   :  { %2250 = vmatpush3.bf16.msra.mxu0 %v2577_v36  ;;  %2272 = vmatpush3.bf16.msra.mxu1 %v2578_v37 }
 0x970   :  { %2251 = vmatprep.subr.bf16.mxu0 %v2579_v38  ;;  %2273 = vmatprep.subr.bf16.mxu1 %v2580_v29 }
 0x973   :  { %2252 = vmatpush3.bf16.msra.mxu0 %v2581_v39  ;;  %2274 = vmatpush3.bf16.msra.mxu1 %v2582_v40 }
 0x974   :  { %2253 = vmatprep.subr.bf16.mxu0 %v2583_v35  ;;  %2275 = vmatprep.subr.bf16.mxu1 %v2584_v41 }
 0x977   :  { %2254 = vmatpush3.bf16.msra.mxu0 %v2585_v42  ;;  %2276 = vmatpush3.bf16.msra.mxu1 %v2586_v3 }
 0x978   :  { %2255 = vmatprep.subr.bf16.mxu0 %v2587_v7  ;;  %2277 = vmatprep.subr.bf16.mxu1 %v2588_v31 }
 0x97b   :  { %2256 = vmatpush3.bf16.msra.mxu0 %v2589_v43  ;;  %2278 = vmatpush3.bf16.msra.mxu1 %v2590_v44 }
 0xa31   :  { %v1585_v45 = vpop.f32.mrb[16].mxu0  ;;  %v1628_v46 = vpop.f32.mrb[12].mxu1 }
 0xa32   :  { %v1645_v48 = vmul.f32 0.70710677, %v1585_v45  ;;  %v1647_v49 = vmul.f32 0.70710677, %v1628_v46  ;;  %v1587_v51 = vpop.f32.mrb[17].mxu0  ;;  %v1630_v52 = vpop.f32.mrb[13].mxu1 }
 0xa33   :  { %v1646_v53 = vmul.f32 0.70710677, %v1587_v51  ;;  %v1589_v54 = vpop.f32.mrb[18].mxu0  ;;  %v1632_v14 = vpop.f32.mrb[14].mxu1  ;;  %v1648_v15 = vmul.f32 0.70710677, %v1630_v52 }
 0xa34   :  { %2627 = verf.f32 %v1645_v48  ;;  %v1649_v56 = vmul.f32 0.70710677, %v1589_v54  ;;  %v1591_v33 = vpop.f32.mrb[19].mxu0  ;;  %v1651_v58 = vmul.f32 0.70710677, %v1632_v14  ;;  %v1634_v59 = vpop.f32.mrb[15].mxu1 }
 0xa35   :  { %2629 = verf.f32 %v1647_v49  ;;  %v1650_v60 = vmul.f32 0.70710677, %v1591_v33  ;;  %v1652_v61 = vmul.f32 0.70710677, %v1634_v59  ;;  %v1637_v8 = vmul.f32 0.5, %v1585_v45 }
 0xa36   :  { %2631 = verf.f32 %v1646_v53  ;;  %v1639_v50 = vmul.f32 0.5, %v1628_v46  ;;  %v1638_v57 = vmul.f32 0.5, %v1587_v51  ;;  %v1641_v12 = vmul.f32 0.5, %v1589_v54 }
 0xa37   :  { %2633 = verf.f32 %v1648_v15  ;;  %v1640_v18 = vmul.f32 0.5, %v1630_v52  ;;  %v1643_v20 = vmul.f32 0.5, %v1632_v14  ;;  %v1642_v27 = vmul.f32 0.5, %v1591_v33 }
 0xa38   :  { %2635 = verf.f32 %v1649_v56  ;;  %v1644_v23 = vmul.f32 0.5, %v1634_v59 }
 0xa39   :  { %2637 = verf.f32 %v1651_v58 }
 0xa3a   :  { %2639 = verf.f32 %v1650_v60 }
 0xa3b   :  { %2641 = verf.f32 %v1652_v61 }
 0xa3e   :  { %v2628_v62 = vpop.eup %2627 }
 0xa3f   :  { %v2630_v63 = vpop.eup %2629  ;;  %v1661_v5 = vadd.f32 1.0, %v2628_v62 }
 0xa40   :  { %v2632_v2 = vpop.eup %2631  ;;  %v1663_v47 = vadd.f32 1.0, %v2630_v63 }
 0xa41   :  { %v2634_v4 = vpop.eup %2633  ;;  %v1662_v10 = vadd.f32 1.0, %v2632_v2  ;;  %v1669_v25 = vmul.f32 %v1661_v5, %v1637_v8 }
 0xa42   :  { %v2636_v6 = vpop.eup %2635  ;;  %v1664_v19 = vadd.f32 1.0, %v2634_v4  ;;  %v1671_v30 = vmul.f32 %v1663_v47, %v1639_v50 }
 0xa43   :  { %v2638_v9 = vpop.eup %2637  ;;  %v1665_v16 = vadd.f32 1.0, %v2636_v6  ;;  %v1670_v32 = vmul.f32 %v1662_v10, %v1638_v57 }
 0xa44   :  { %v2640_v17 = vpop.eup %2639  ;;  %v1667_v21 = vadd.f32 1.0, %v2638_v9  ;;  %v1672_v37 = vmul.f32 %v1664_v19, %v1640_v18 }
 0xa45   :  { %v2642_v22 = vpop.eup %2641  ;;  %v1673_v26 = vmul.f32 %v1665_v16, %v1641_v12  ;;  %v1666_v28 = vadd.f32 1.0, %v2640_v17 }
 0xa46   :  { %v1675_v0 = vmul.f32 %v1667_v21, %v1643_v20  ;;  %v1668_v24 = vadd.f32 1.0, %v2642_v22 }
 0xa47   :  { %v1677_v34 = vpack.c.bf16 %v1673_v26, %v1669_v25  ;;  %v1674_v36 = vmul.f32 %v1666_v28, %v1642_v27 }
 0xa48   :  { %v1679_v38 = vpack.c.bf16 %v1675_v0, %v1671_v30  ;;  %v1676_v29 = vmul.f32 %v1668_v24, %v1644_v23 }
 0xa49   :  { %v1678_v39 = vpack.c.bf16 %v1674_v36, %v1670_v32 }
 0xa4a   :  { %v1680_v40 = vpack.c.bf16 %v1676_v29, %v1672_v37 }
 0xa4b   :  { %1969 = vmatprep.mubr.bf16.mxu0 %v1678_v39 }
 0xa4c   :  { %2010 = vmatprep.mubr.bf16.mxu1 %v1680_v40  ;;  %1970 = vmatmul.mubr.bf16.vlgmr.msra.gmra.mrb[20].mxu0 %v1677_v34 }
 0xa4d   :  { %2011 = vmatmul.mubr.bf16.vlgmr.msra.gmra.mrb[16].mxu1 %v1679_v38 }
 0xb1f   :  { %v2257_v35 = vpop.f32.mrb[20].mxu0 }
 0xb20   :  { %v2279_v41 = vpop.f32.mrb[16].mxu1  ;;  %v2258_v42 = vpop.f32.mrb[21].mxu0 }
 0xb21   :  { %v2259_v3 = vadd.f32 %v2258_v42, %v2257_v35  ;;  %v2280_v7 = vpop.f32.mrb[17].mxu1  ;;  %v2260_v31 = vpop.f32.mrb[22].mxu0 }
 0xb22   :  { %v2281_v43 = vadd.f32 %v2280_v7, %v2279_v41  ;;  %v2282_v44 = vpop.f32.mrb[18].mxu1  ;;  %v2261_v45 = vpop.f32.mrb[23].mxu0 }
 0xb23   :  { %v2262_v46 = vadd.f32 %v2261_v45, %v2260_v31  ;;  %v2283_v48 = vpop.f32.mrb[19].mxu1 }
 0xb24   :  { %v2013_v49 = vadd.f32 %v2281_v43, %v2259_v3  ;;  %v2284_v51 = vadd.f32 %v2283_v48, %v2282_v44 }
 0xb26   :  { %v2016_v52 = vadd.f32 %v2284_v51, %v2262_v46  ;;  %v2019_v53 = vadd.f32 %v2013_v49, %v3156_v55 }
 0xb28   :  { %2021 = vadd.xlane.f32.xlu0 %v2019_v53  ;;  %v2020_v54 = vadd.f32 %v2016_v52, %v3159_v13 }
 0xb2a   :  { %2023 = vadd.xlane.f32.xlu1 %v2020_v54 }
 0xbb5   :  { %v2022_v14 = vpop.xlane.xlu0 %2021 }
 0xbb6   :  { %v2025_v15 = vmul.f32 0.0078125, %v2022_v14 }
 0xbb7   :  { %v2024_v56 = vpop.xlane.xlu1 %2023 }
 0xbb8   :  { %v2027_v33 = vsub.f32 %v2019_v53, %v2025_v15  ;;  %v2026_v58 = vmul.f32 0.0078125, %v2024_v56 }
 0xbba   :  { %v2028_v59 = vsub.f32 %v2020_v54, %v2026_v58  ;;  %v2029_v60 = vmul.f32 %v2027_v33, %v2027_v33 }
 0xbbc   :  { %2031 = vadd.xlane.f32.xlu0 %v2029_v60  ;;  %v2030_v61 = vmul.f32 %v2028_v59, %v2028_v59 }
 0xbbe   :  { %2033 = vadd.xlane.f32.xlu1 %v2030_v61 }
 0xc49   :  { %v2032_v62 = vpop.xlane.xlu0 %2031 }
 0xc4a   :  { %v2035_v63 = vmul.f32 0.0078125, %v2032_v62 }
 0xc4b   :  { %v2034_v2 = vpop.xlane.xlu1 %2033 }
 0xc4c   :  { %v2037_v4 = vadd.f32 1e-05, %v2035_v63  ;;  %v2036_v5 = vmul.f32 0.0078125, %v2034_v2 }
 0xc4e   :  { %2643 = vrsqrt.f32 %v2037_v4  ;;  %v2038_v55 = vadd.f32 1e-05, %v2036_v5 }
 0xc50   :  { %2645 = vrsqrt.f32 %v2038_v55 }
 0xc58   :  { %v2644_v13 = vpop.eup %2643 }
 0xc59   :  { %v2041_v6 = vmul.f32 %v2644_v13, %v2027_v33 }
 0xc5a   :  { %v2646_v8 = vpop.eup %2645 }
 0xc5b   :  { %v2042_v50 = vmul.f32 %v2646_v8, %v2028_v59  ;;  %v2043_v47 = vmul.f32 %v3144_v1, %v2041_v6 }
 0xc5d   :  { %v2044_v9 = vmul.f32 %v3144_v1, %v2042_v50  ;;  %v2045_v57 = vadd.f32 %v3152_v11, %v2043_v47 }
 0xc5f   :  { %v2046_v10 = vadd.f32 %v3152_v11, %v2044_v9  ;;  %2047 = vst [vmem:[#allocation14] sm:$0xff] %v2045_v57 }
 0xc61   :  { %2048 = vst [vmem:[#allocation14 + $0x8] sm:$0xff] %v2046_v10 }
 0xc62   :  { %2790 = shalt.err (!%p2787_p10)
}
 0xc63   :  { %s2791_s26 = scalar_lea.hbm %s3192_s8, 256 }
 0xc64   :  { %p2792_p11 = scmp.ne.s32.totalorder %s3192_s8, %s2791_s26  ;;  %p2795_p12 = scmp.lt.u32.totalorder %s2791_s26, %s3192_s8 }
 0xc66   :  { %p2797_p13 = pnand %p2795_p12, %p2792_p11 }
 0xc68   :  { %2800 = shalt.err (!%p2797_p13)
}
 0xc69   :  { %2060 = dma.vmem_to_hbm [thread:$0]  %s2055_s5, 256, %s3192_s8, [#allocation5], %s2813_s17, %s2813_s17, %s2814_s18  }
 0xc6a   :  { %2809 = dma.done.wait [#allocation5], 256  }
 0xc6b   :  { %2810 = vsyncadd [#allocation5], 4294967040 }
 0xc6c   :  { %2064 = vsyncpa [#allocation4], 1 }
 0xc6d   :  { %2065 = vsyncpa [#allocation7], 1 }
 0xc6e   :  { %2066 = vsyncpa [#allocation10], 1 }
 0xc6f   :  { %2067 = vsyncpa [#allocation13], 1 }
 0xc70   :  { %2068 = vsyncpa [#allocation5], 1 }

</bundles_post_ra>
